<compile_context>
chip_gen: v5e
topology: v5e:2x2
jax: 0.10.0
libtpu: 0.0.40
codegen_flags: <defaults>
</compile_context>

<pallas_src>
import math

import jax
import jax.numpy as jnp
from jax.experimental import pallas as pl
from jax.experimental.pallas import tpu as pltpu

_VMEM_LIMIT = 64 * 1024 * 1024  # safe on v5e/v6e (128 MiB) and v7x (64 MiB)


def _largest_divisor_leq(n, cap):
    """Largest divisor of n that is <= cap (time-block size that tiles T exactly)."""
    for d in range(min(n, cap), 0, -1):
        if n % d == 0:
            return d
    return 1


# ----------------------------------------------------------------------------
# Fused per-layer LSTM kernel (time-blocked)
# ----------------------------------------------------------------------------
def _make_lstm_kernel(*, fuse_pre: bool, fuse_fc: bool, batch: int, hidden: int,
                      tc: int):
    """Build the fused LSTM-layer kernel.

    Ref order (inputs, outputs, scratch):
      x, [w_pre, b_pre], w_ih, bias, w_hh, h0, c0, [w_fc, b_fc],
      out, hn, cn,
      gx_sc, h_sc, c_sc, [y_sc]
    """
    B, H, Tc = batch, hidden, tc

    def kernel(*refs):
        it = iter(refs)
        x_ref = next(it)
        if fuse_pre:
            wpre_ref = next(it)
            bpre_ref = next(it)
        wih_ref = next(it)
        bias_ref = next(it)
        whh_ref = next(it)
        h0_ref = next(it)
        c0_ref = next(it)
        if fuse_fc:
            wfc_ref = next(it)
            bfc_ref = next(it)
        out_ref = next(it)
        hn_ref = next(it)
        cn_ref = next(it)
        gx_sc = next(it)
        h_sc = next(it)
        c_sc = next(it)
        if fuse_fc:
            y_sc = next(it)

        tb = pl.program_id(0)

        @pl.when(tb == 0)
        def _():
            h_sc[...] = h0_ref[...].astype(jnp.float32)
            c_sc[...] = c0_ref[...].astype(jnp.float32)

        # ---- hoisted input projection for the whole time block (big MXU matmuls)
        x = x_ref[...]
        if fuse_pre:
            x = jnp.dot(x.astype(wpre_ref.dtype), wpre_ref[...],
                        preferred_element_type=jnp.float32) + bpre_ref[...]
            x = jnp.maximum(x, 0.0)                       # pre_fc + ReLU
        gx_sc[...] = (jnp.dot(x.astype(wih_ref.dtype), wih_ref[...],
                              preferred_element_type=jnp.float32)
                      + bias_ref[...])                    # x @ W_ih^T + (b_ih + b_hh)

        whh = whh_ref[...]                                # VMEM-resident (H, 4H)
        h_prev = h_sc[...]
        c_prev = c_sc[...]

        # ---- serial recurrence over the Tc steps of this block (static unroll)
        for t in range(Tc):
            gates = gx_sc[t * B:(t + 1) * B, :] + jnp.dot(
                h_prev.astype(whh.dtype), whh, preferred_element_type=jnp.float32)
            i_g = jax.nn.sigmoid(gates[:, 0 * H:1 * H])
            f_g = jax.nn.sigmoid(gates[:, 1 * H:2 * H])
            g_g = jnp.tanh(gates[:, 2 * H:3 * H])
            o_g = jax.nn.sigmoid(gates[:, 3 * H:4 * H])
            c_prev = f_g * c_prev + i_g * g_g
            h_prev = o_g * jnp.tanh(c_prev)
            if fuse_fc:
                y_sc[t * B:(t + 1) * B, :] = h_prev
            else:
                out_ref[t * B:(t + 1) * B, :] = h_prev.astype(out_ref.dtype)

        h_sc[...] = h_prev
        c_sc[...] = c_prev

        if fuse_fc:
            # fused final ReLU + fc over the whole time block (one row matmul)
            y = jnp.maximum(y_sc[...], 0.0)
            out_ref[...] = (jnp.dot(y.astype(wfc_ref.dtype), wfc_ref[...],
                                    preferred_element_type=jnp.float32)
                            + bfc_ref[...]).astype(out_ref.dtype)

        @pl.when(tb == pl.num_programs(0) - 1)
        def _():
            hn_ref[...] = h_prev.astype(hn_ref.dtype)
            cn_ref[...] = c_prev.astype(cn_ref.dtype)

    return kernel


def lstm_layer_pallas(x2d, w_ih_t, bias, w_hh_t, h0, c0, *, batch,
                      w_pre=None, b_pre=None, w_fc=None, b_fc=None,
                      time_block=32):
    """One fused LSTM layer (time-blocked grid over the sequential time axis).

    x2d:    (T*B, Din) time-major flat rows (Din = input_dim if w_pre is given,
            else hidden_dim).
    w_ih_t: (Din_lstm, 4H) transposed input weight; bias = b_ih + b_hh (4H,)
    w_hh_t: (H, 4H) transposed recurrent weight (PyTorch gate order i,f,g,o)
    h0/c0:  (B, H) initial state
    w_pre/b_pre: optional fused pre_fc (layer 0)
    w_fc/b_fc:   optional fused ReLU+fc (last layer)
    Returns (out2d (T*B, Dout), h_n (B, H), c_n (B, H)).
    """
    N, Din = x2d.shape
    B = batch
    T = N // B
    H = w_hh_t.shape[0]
    G = 4 * H
    fuse_pre = w_pre is not None
    fuse_fc = w_fc is not None
    Tc = _largest_divisor_leq(T, time_block)
    NB = Tc * B
    Dout = int(w_fc.shape[1]) if fuse_fc else H

    kernel = _make_lstm_kernel(fuse_pre=fuse_pre, fuse_fc=fuse_fc,
                               batch=B, hidden=H, tc=Tc)

    in_arrays = [x2d]
    in_specs = [pl.BlockSpec((NB, Din), lambda tb: (tb, 0))]
    if fuse_pre:
        in_arrays += [w_pre, b_pre.reshape(1, -1)]
        in_specs += [
            pl.BlockSpec((w_pre.shape[0], w_pre.shape[1]), lambda tb: (0, 0)),
            pl.BlockSpec((1, w_pre.shape[1]), lambda tb: (0, 0)),
        ]
    in_arrays += [w_ih_t, bias.reshape(1, G), w_hh_t, h0, c0]
    in_specs += [
        pl.BlockSpec((w_ih_t.shape[0], G), lambda tb: (0, 0)),
        pl.BlockSpec((1, G), lambda tb: (0, 0)),
        pl.BlockSpec((H, G), lambda tb: (0, 0)),
        pl.BlockSpec((B, H), lambda tb: (0, 0)),
        pl.BlockSpec((B, H), lambda tb: (0, 0)),
    ]
    if fuse_fc:
        in_arrays += [w_fc, b_fc.reshape(1, Dout)]
        in_specs += [
            pl.BlockSpec((H, Dout), lambda tb: (0, 0)),
            pl.BlockSpec((1, Dout), lambda tb: (0, 0)),
        ]

    out_shapes = (
        jax.ShapeDtypeStruct((N, Dout), jnp.float32),
        jax.ShapeDtypeStruct((B, H), jnp.float32),
        jax.ShapeDtypeStruct((B, H), jnp.float32),
    )
    out_specs = (
        pl.BlockSpec((NB, Dout), lambda tb: (tb, 0)),
        pl.BlockSpec((B, H), lambda tb: (0, 0)),
        pl.BlockSpec((B, H), lambda tb: (0, 0)),
    )
    scratch = [
        pltpu.VMEM((NB, G), jnp.float32),   # gx: block's hoisted input gates
        pltpu.VMEM((B, H), jnp.float32),    # h carry across time blocks
        pltpu.VMEM((B, H), jnp.float32),    # c carry across time blocks
    ]
    if fuse_fc:
        scratch.append(pltpu.VMEM((NB, H), jnp.float32))   # block hidden outputs

    grid_spec = pltpu.PrefetchScalarGridSpec(
        num_scalar_prefetch=0,
        grid=(T // Tc,),
        in_specs=in_specs,
        out_specs=out_specs,
        scratch_shapes=scratch,
    )
    return pl.pallas_call(
        kernel,
        out_shape=out_shapes,
        grid_spec=grid_spec,
        compiler_params=pltpu.CompilerParams(
            dimension_semantics=("arbitrary",),   # time is a serial recurrence
            vmem_limit_bytes=_VMEM_LIMIT),
    )(*in_arrays)


# ----------------------------------------------------------------------------
# Parameter construction (deterministic, PyTorch-style uniform init)
# ----------------------------------------------------------------------------
def init_params(key, input_dim, hidden_dim, output_dim, n_layers):
    params = {}

    def uniform(key, shape, bound):
        return jax.random.uniform(key, shape, jnp.float32, -bound, bound)

    k = jax.random.split(key, 4 + 4 * n_layers)
    ki = iter(k)

    b_pre = 1.0 / math.sqrt(input_dim)
    params["pre_fc_w"] = uniform(next(ki), (hidden_dim, input_dim), b_pre)  # (H, I)
    params["pre_fc_b"] = uniform(next(ki), (hidden_dim,), b_pre)

    b_lstm = 1.0 / math.sqrt(hidden_dim)
    params["lstm"] = []
    for _ in range(n_layers):
        w_ih = uniform(next(ki), (4 * hidden_dim, hidden_dim), b_lstm)  # (4H, Hin)
        w_hh = uniform(next(ki), (4 * hidden_dim, hidden_dim), b_lstm)  # (4H, H)
        b_ih = uniform(next(ki), (4 * hidden_dim,), b_lstm)
        b_hh = uniform(next(ki), (4 * hidden_dim,), b_lstm)
        params["lstm"].append((w_ih, w_hh, b_ih, b_hh))

    b_fc = 1.0 / math.sqrt(hidden_dim)
    params["fc_w"] = uniform(next(ki), (output_dim, hidden_dim), b_fc)  # (O, H)
    params["fc_b"] = uniform(next(ki), (output_dim,), b_fc)
    return params


# ----------------------------------------------------------------------------
# Full forward (matches LSTMPredictor.forward)
# ----------------------------------------------------------------------------
def lstm_predictor_forward(params, x, hidden, matmul_dtype=jnp.float32):
    """x: (B, T, input_dim); hidden = (h0, c0) each (n_layers, B, H).
    Returns (out (B, T, output_dim), (h_n, c_n)).

    matmul_dtype=jnp.bfloat16 routes all matmuls through bf16 MXU inputs with
    f32 accumulation; cell state and gate nonlinearities stay f32.
    """
    B, T, I = x.shape
    O = params["fc_w"].shape[0]
    h0_all, c0_all = hidden
    n_layers = len(params["lstm"])

    md = matmul_dtype
    # Pre-transposed / combined-bias weights (in a deployed model these would be
    # stored in this layout once instead of per call).
    w_pre = params["pre_fc_w"].T.astype(md)                       # (I, H)
    b_pre = params["pre_fc_b"]
    w_fc = params["fc_w"].T.astype(md)                            # (H, O)
    b_fc = params["fc_b"]
    lstm_w = [(w_ih.T.astype(md), w_hh.T.astype(md), (b_ih + b_hh))
              for (w_ih, w_hh, b_ih, b_hh) in params["lstm"]]

    # Time-major flat rows internally; only the small I-wide input is transposed.
    cur = x.transpose(1, 0, 2).reshape(T * B, I)                  # (T*B, I)

    h_finals, c_finals = [], []
    for l, (w_ih_l, w_hh_l, bias_l) in enumerate(lstm_w):
        first = (l == 0)
        last = (l == n_layers - 1)
        cur, h_n, c_n = lstm_layer_pallas(
            cur, w_ih_l, bias_l, w_hh_l, h0_all[l], c0_all[l],
            batch=B,
            w_pre=w_pre if first else None,
            b_pre=b_pre if first else None,
            w_fc=w_fc if last else None,
            b_fc=b_fc if last else None,
        )
        h_finals.append(h_n)
        c_finals.append(c_n)

    out = cur.reshape(T, B, O).transpose(1, 0, 2)                 # back to batch-first
    return out, (jnp.stack(h_finals, axis=0), jnp.stack(c_finals, axis=0))


# ----------------------------------------------------------------------------
# Pure-JAX reference (for a silent correctness check)
# ----------------------------------------------------------------------------
def reference_forward(params, x, hidden):
    B, T, I = x.shape
    H = params["pre_fc_w"].shape[0]
    h0_all, c0_all = hidden
    h = jnp.maximum(x @ params["pre_fc_w"].T + params["pre_fc_b"], 0.0)  # (B,T,H)
    layer_in = h
    h_fs, c_fs = [], []
    for l, (w_ih, w_hh, b_ih, b_hh) in enumerate(params["lstm"]):
        def step(carry, x_t):
            h_t, c_t = carry
            g = x_t @ w_ih.T + b_ih + h_t @ w_hh.T + b_hh
            i_g = jax.nn.sigmoid(g[:, 0:H])
            f_g = jax.nn.sigmoid(g[:, H:2 * H])
            g_g = jnp.tanh(g[:, 2 * H:3 * H])
            o_g = jax.nn.sigmoid(g[:, 3 * H:4 * H])
            c_n = f_g * c_t + i_g * g_g
            h_n = o_g * jnp.tanh(c_n)
            return (h_n, c_n), h_n
        (h_f, c_f), ys = jax.lax.scan(step, (h0_all[l], c0_all[l]),
                                      layer_in.transpose(1, 0, 2))
        layer_in = ys.transpose(1, 0, 2)
        h_fs.append(h_f)
        c_fs.append(c_f)
    out = jnp.maximum(layer_in, 0.0) @ params["fc_w"].T + params["fc_b"]
    return out, (jnp.stack(h_fs, 0), jnp.stack(c_fs, 0))


# ----------------------------------------------------------------------------
if __name__ == "__main__":
    B, T = 2, 8
    input_dim, hidden_dim, output_dim, n_layers = 16, 32, 4, 2

    key = jax.random.PRNGKey(0)
    kp, kx = jax.random.split(key)
    params = init_params(kp, input_dim, hidden_dim, output_dim, n_layers)
    x = jax.random.normal(kx, (B, T, input_dim), jnp.float32)
    hidden = (jnp.zeros((n_layers, B, hidden_dim), jnp.float32),
              jnp.zeros((n_layers, B, hidden_dim), jnp.float32))

    fwd = jax.jit(lstm_predictor_forward, static_argnames=("matmul_dtype",))

    # f32 path: exact check against the pure-JAX reference.
    out, (h_n, c_n) = fwd(params, x, hidden)
    jax.block_until_ready((out, h_n, c_n))

    out_ref, (h_ref, c_ref) = reference_forward(params, x, hidden)
    assert out.shape == (B, T, output_dim)
    assert jnp.allclose(out, out_ref, atol=1e-4, rtol=1e-4)
    assert jnp.allclose(h_n, h_ref, atol=1e-4, rtol=1e-4)
    assert jnp.allclose(c_n, c_ref, atol=1e-4, rtol=1e-4)

    # bf16 MXU path (f32 accumulation / f32 cell state): loose check only.
    out_bf, (h_bf, c_bf) = fwd(params, x, hidden, matmul_dtype=jnp.bfloat16)
    jax.block_until_ready((out_bf, h_bf, c_bf))
    assert bool(jnp.all(jnp.isfinite(out_bf)))
    assert jnp.allclose(out_bf, out_ref, atol=5e-2, rtol=5e-2)

    print("KERNEL_OK")
</pallas_src>

<mosaic_0001>
module attributes {stable_mosaic.version = 11 : i64} {
  func.func @kernel(%arg0: i32, %arg1: memref<16x16xf32, #tpu.memory_space<vmem>>, %arg2: memref<16x32xf32, #tpu.memory_space<vmem>>, %arg3: memref<1x32xf32, #tpu.memory_space<vmem>>, %arg4: memref<32x128xf32, #tpu.memory_space<vmem>>, %arg5: memref<1x128xf32, #tpu.memory_space<vmem>>, %arg6: memref<32x128xf32, #tpu.memory_space<vmem>>, %arg7: memref<2x32xf32, #tpu.memory_space<vmem>>, %arg8: memref<2x32xf32, #tpu.memory_space<vmem>>, %arg9: memref<16x32xf32, #tpu.memory_space<vmem>>, %arg10: memref<2x32xf32, #tpu.memory_space<vmem>>, %arg11: memref<2x32xf32, #tpu.memory_space<vmem>>, %arg12: memref<16x128xf32, #tpu.memory_space<vmem>>, %arg13: memref<2x32xf32, #tpu.memory_space<vmem>>, %arg14: memref<2x32xf32, #tpu.memory_space<vmem>>) attributes {dimension_semantics = [#tpu.dimension_semantics<arbitrary>], iteration_bounds = array<i64: 1>, scalar_prefetch = 0 : i64, scratch_operands = 3 : i64, tpu.core_type = #tpu.core_type<tc>, window_params = [{transform_indices = @transform_0, window_bounds = array<i64: 16, 16>}, {pipeline_mode = #tpu.pipeline_mode<synchronous>, transform_indices = @transform_1, window_bounds = array<i64: 16, 32>}, {pipeline_mode = #tpu.pipeline_mode<synchronous>, transform_indices = @transform_2, window_bounds = array<i64: 1, 32>}, {pipeline_mode = #tpu.pipeline_mode<synchronous>, transform_indices = @transform_3, window_bounds = array<i64: 32, 128>}, {pipeline_mode = #tpu.pipeline_mode<synchronous>, transform_indices = @transform_4, window_bounds = array<i64: 1, 128>}, {pipeline_mode = #tpu.pipeline_mode<synchronous>, transform_indices = @transform_5, window_bounds = array<i64: 32, 128>}, {pipeline_mode = #tpu.pipeline_mode<synchronous>, transform_indices = @transform_6, window_bounds = array<i64: 2, 32>}, {pipeline_mode = #tpu.pipeline_mode<synchronous>, transform_indices = @transform_7, window_bounds = array<i64: 2, 32>}, {transform_indices = @transform_8, window_bounds = array<i64: 16, 32>}, {pipeline_mode = #tpu.pipeline_mode<synchronous>, transform_indices = @transform_9, window_bounds = array<i64: 2, 32>}, {pipeline_mode = #tpu.pipeline_mode<synchronous>, transform_indices = @transform_10, window_bounds = array<i64: 2, 32>}]} {
    %c0_i32 = arith.constant 0 : i32
    %0 = arith.cmpi eq, %arg0, %c0_i32 : i32
    %1 = arith.extui %0 : i1 to i32
    %c0_i32_0 = arith.constant 0 : i32
    %2 = arith.cmpi ne, %1, %c0_i32_0 : i32
    scf.if %2 {
      %c0_83 = arith.constant 0 : index
      %c0_84 = arith.constant 0 : index
      %257 = vector.load %arg7[%c0_83, %c0_84] : memref<2x32xf32, #tpu.memory_space<vmem>>, vector<2x32xf32>
      %c0_85 = arith.constant 0 : index
      %c0_86 = arith.constant 0 : index
      %258 = vector.load %arg13[%c0_85, %c0_86] : memref<2x32xf32, #tpu.memory_space<vmem>>, vector<2x32xf32>
      tpu.vector_store %arg13[%c0_85, %c0_86], %257 {strides = array<i32>} : memref<2x32xf32, #tpu.memory_space<vmem>>, vector<2x32xf32>,
      %c0_87 = arith.constant 0 : index
      %c0_88 = arith.constant 0 : index
      %259 = vector.load %arg8[%c0_87, %c0_88] : memref<2x32xf32, #tpu.memory_space<vmem>>, vector<2x32xf32>
      %c0_89 = arith.constant 0 : index
      %c0_90 = arith.constant 0 : index
      %260 = vector.load %arg14[%c0_89, %c0_90] : memref<2x32xf32, #tpu.memory_space<vmem>>, vector<2x32xf32>
      tpu.vector_store %arg14[%c0_89, %c0_90], %259 {strides = array<i32>} : memref<2x32xf32, #tpu.memory_space<vmem>>, vector<2x32xf32>,
    } else {
    }
    %c0 = arith.constant 0 : index
    %c0_1 = arith.constant 0 : index
    %3 = vector.load %arg1[%c0, %c0_1] : memref<16x16xf32, #tpu.memory_space<vmem>>, vector<16x16xf32>
    %c0_2 = arith.constant 0 : index
    %c0_3 = arith.constant 0 : index
    %4 = vector.load %arg2[%c0_2, %c0_3] : memref<16x32xf32, #tpu.memory_space<vmem>>, vector<16x32xf32>
    %cst = arith.constant dense<0.000000e+00> : vector<16x32xf32>
    %5 = tpu.matmul %3, %4, %cst {dimension_numbers = #tpu.dot_dimension_numbers<[1], [0], [0], [1], [0, 0, 1, 1], [], []>} : vector<16x16xf32>, vector<16x32xf32>, vector<16x32xf32> -> vector<16x32xf32>
    %c0_4 = arith.constant 0 : index
    %c0_5 = arith.constant 0 : index
    %6 = vector.load %arg3[%c0_4, %c0_5] : memref<1x32xf32, #tpu.memory_space<vmem>>, vector<1x32xf32>
    %7 = vector.broadcast %6 : vector<1x32xf32> to vector<16x32xf32>
    %8 = arith.addf %5, %7 : vector<16x32xf32>
    %cst_6 = arith.constant 0.000000e+00 : f32
    %9 = vector.broadcast %cst_6 : f32 to vector<16x32xf32>
    %10 = arith.maximumf %8, %9 : vector<16x32xf32>
    %c0_7 = arith.constant 0 : index
    %c0_8 = arith.constant 0 : index
    %11 = vector.load %arg4[%c0_7, %c0_8] : memref<32x128xf32, #tpu.memory_space<vmem>>, vector<32x128xf32>
    %cst_9 = arith.constant dense<0.000000e+00> : vector<16x128xf32>
    %12 = tpu.matmul %10, %11, %cst_9 {dimension_numbers = #tpu.dot_dimension_numbers<[1], [0], [0], [1], [0, 0, 1, 1], [], []>} : vector<16x32xf32>, vector<32x128xf32>, vector<16x128xf32> -> vector<16x128xf32>
    %c0_10 = arith.constant 0 : index
    %c0_11 = arith.constant 0 : index
    %13 = vector.load %arg5[%c0_10, %c0_11] : memref<1x128xf32, #tpu.memory_space<vmem>>, vector<1x128xf32>
    %14 = vector.broadcast %13 : vector<1x128xf32> to vector<16x128xf32>
    %15 = arith.addf %12, %14 : vector<16x128xf32>
    %c0_12 = arith.constant 0 : index
    %c0_13 = arith.constant 0 : index
    %16 = vector.load %arg12[%c0_12, %c0_13] : memref<16x128xf32, #tpu.memory_space<vmem>>, vector<16x128xf32>
    tpu.vector_store %arg12[%c0_12, %c0_13], %15 {strides = array<i32>} : memref<16x128xf32, #tpu.memory_space<vmem>>, vector<16x128xf32>,
    %c0_14 = arith.constant 0 : index
    %c0_15 = arith.constant 0 : index
    %17 = vector.load %arg6[%c0_14, %c0_15] : memref<32x128xf32, #tpu.memory_space<vmem>>, vector<32x128xf32>
    %c0_16 = arith.constant 0 : index
    %c0_17 = arith.constant 0 : index
    %18 = vector.load %arg13[%c0_16, %c0_17] : memref<2x32xf32, #tpu.memory_space<vmem>>, vector<2x32xf32>
    %c0_18 = arith.constant 0 : index
    %c0_19 = arith.constant 0 : index
    %19 = vector.load %arg14[%c0_18, %c0_19] : memref<2x32xf32, #tpu.memory_space<vmem>>, vector<2x32xf32>
    %c0_20 = arith.constant 0 : index
    %c0_21 = arith.constant 0 : index
    %20 = vector.load %arg12[%c0_20, %c0_21] : memref<16x128xf32, #tpu.memory_space<vmem>>, vector<2x128xf32>
    %cst_22 = arith.constant dense<0.000000e+00> : vector<2x128xf32>
    %21 = tpu.matmul %18, %17, %cst_22 {dimension_numbers = #tpu.dot_dimension_numbers<[1], [0], [0], [1], [0, 0, 1, 1], [], []>} : vector<2x32xf32>, vector<32x128xf32>, vector<2x128xf32> -> vector<2x128xf32>
    %22 = arith.addf %20, %21 : vector<2x128xf32>
    %23 = vector.extract_strided_slice %22 {offsets = [0, 0], sizes = [2, 32], strides = [1, 1]} : vector<2x128xf32> to vector<2x32xf32>
    %24 = arith.negf %23 : vector<2x32xf32>
    %25 = math.exp %24 : vector<2x32xf32>
    %cst_23 = arith.constant 1.000000e+00 : f32
    %26 = vector.broadcast %cst_23 : f32 to vector<2x32xf32>
    %27 = arith.addf %26, %25 : vector<2x32xf32>
    %28 = arith.divf %26, %27 : vector<2x32xf32>
    %29 = vector.extract_strided_slice %22 {offsets = [0, 32], sizes = [2, 32], strides = [1, 1]} : vector<2x128xf32> to vector<2x32xf32>
    %30 = arith.negf %29 : vector<2x32xf32>
    %31 = math.exp %30 : vector<2x32xf32>
    %cst_24 = arith.constant 1.000000e+00 : f32
    %32 = vector.broadcast %cst_24 : f32 to vector<2x32xf32>
    %33 = arith.addf %32, %31 : vector<2x32xf32>
    %34 = arith.divf %32, %33 : vector<2x32xf32>
    %35 = vector.extract_strided_slice %22 {offsets = [0, 64], sizes = [2, 32], strides = [1, 1]} : vector<2x128xf32> to vector<2x32xf32>
    %36 = math.tanh %35 : vector<2x32xf32>
    %37 = vector.extract_strided_slice %22 {offsets = [0, 96], sizes = [2, 32], strides = [1, 1]} : vector<2x128xf32> to vector<2x32xf32>
    %38 = arith.negf %37 : vector<2x32xf32>
    %39 = math.exp %38 : vector<2x32xf32>
    %cst_25 = arith.constant 1.000000e+00 : f32
    %40 = vector.broadcast %cst_25 : f32 to vector<2x32xf32>
    %41 = arith.addf %40, %39 : vector<2x32xf32>
    %42 = arith.divf %40, %41 : vector<2x32xf32>
    %43 = arith.mulf %34, %19 : vector<2x32xf32>
    %44 = arith.mulf %28, %36 : vector<2x32xf32>
    %45 = arith.addf %43, %44 : vector<2x32xf32>
    %46 = math.tanh %45 : vector<2x32xf32>
    %47 = arith.mulf %42, %46 : vector<2x32xf32>
    %c0_26 = arith.constant 0 : index
    %c0_27 = arith.constant 0 : index
    %48 = vector.load %arg9[%c0_26, %c0_27] : memref<16x32xf32, #tpu.memory_space<vmem>>, vector<2x32xf32>
    tpu.vector_store %arg9[%c0_26, %c0_27], %47 {strides = array<i32>} : memref<16x32xf32, #tpu.memory_space<vmem>>, vector<2x32xf32>,
    %c2 = arith.constant 2 : index
    %c0_28 = arith.constant 0 : index
    %49 = vector.load %arg12[%c2, %c0_28] : memref<16x128xf32, #tpu.memory_space<vmem>>, vector<2x128xf32>
    %cst_29 = arith.constant dense<0.000000e+00> : vector<2x128xf32>
    %50 = tpu.matmul %47, %17, %cst_29 {dimension_numbers = #tpu.dot_dimension_numbers<[1], [0], [0], [1], [0, 0, 1, 1], [], []>} : vector<2x32xf32>, vector<32x128xf32>, vector<2x128xf32> -> vector<2x128xf32>
    %51 = arith.addf %49, %50 : vector<2x128xf32>
    %52 = vector.extract_strided_slice %51 {offsets = [0, 0], sizes = [2, 32], strides = [1, 1]} : vector<2x128xf32> to vector<2x32xf32>
    %53 = arith.negf %52 : vector<2x32xf32>
    %54 = math.exp %53 : vector<2x32xf32>
    %cst_30 = arith.constant 1.000000e+00 : f32
    %55 = vector.broadcast %cst_30 : f32 to vector<2x32xf32>
    %56 = arith.addf %55, %54 : vector<2x32xf32>
    %57 = arith.divf %55, %56 : vector<2x32xf32>
    %58 = vector.extract_strided_slice %51 {offsets = [0, 32], sizes = [2, 32], strides = [1, 1]} : vector<2x128xf32> to vector<2x32xf32>
    %59 = arith.negf %58 : vector<2x32xf32>
    %60 = math.exp %59 : vector<2x32xf32>
    %cst_31 = arith.constant 1.000000e+00 : f32
    %61 = vector.broadcast %cst_31 : f32 to vector<2x32xf32>
    %62 = arith.addf %61, %60 : vector<2x32xf32>
    %63 = arith.divf %61, %62 : vector<2x32xf32>
    %64 = vector.extract_strided_slice %51 {offsets = [0, 64], sizes = [2, 32], strides = [1, 1]} : vector<2x128xf32> to vector<2x32xf32>
    %65 = math.tanh %64 : vector<2x32xf32>
    %66 = vector.extract_strided_slice %51 {offsets = [0, 96], sizes = [2, 32], strides = [1, 1]} : vector<2x128xf32> to vector<2x32xf32>
    %67 = arith.negf %66 : vector<2x32xf32>
    %68 = math.exp %67 : vector<2x32xf32>
    %cst_32 = arith.constant 1.000000e+00 : f32
    %69 = vector.broadcast %cst_32 : f32 to vector<2x32xf32>
    %70 = arith.addf %69, %68 : vector<2x32xf32>
    %71 = arith.divf %69, %70 : vector<2x32xf32>
    %72 = arith.mulf %63, %45 : vector<2x32xf32>
    %73 = arith.mulf %57, %65 : vector<2x32xf32>
    %74 = arith.addf %72, %73 : vector<2x32xf32>
    %75 = math.tanh %74 : vector<2x32xf32>
    %76 = arith.mulf %71, %75 : vector<2x32xf32>
    %c2_33 = arith.constant 2 : index
    %c0_34 = arith.constant 0 : index
    %77 = vector.load %arg9[%c2_33, %c0_34] : memref<16x32xf32, #tpu.memory_space<vmem>>, vector<2x32xf32>
    tpu.vector_store %arg9[%c2_33, %c0_34], %76 {strides = array<i32>} : memref<16x32xf32, #tpu.memory_space<vmem>>, vector<2x32xf32>,
    %c4 = arith.constant 4 : index
    %c0_35 = arith.constant 0 : index
    %78 = vector.load %arg12[%c4, %c0_35] : memref<16x128xf32, #tpu.memory_space<vmem>>, vector<2x128xf32>
    %cst_36 = arith.constant dense<0.000000e+00> : vector<2x128xf32>
    %79 = tpu.matmul %76, %17, %cst_36 {dimension_numbers = #tpu.dot_dimension_numbers<[1], [0], [0], [1], [0, 0, 1, 1], [], []>} : vector<2x32xf32>, vector<32x128xf32>, vector<2x128xf32> -> vector<2x128xf32>
    %80 = arith.addf %78, %79 : vector<2x128xf32>
    %81 = vector.extract_strided_slice %80 {offsets = [0, 0], sizes = [2, 32], strides = [1, 1]} : vector<2x128xf32> to vector<2x32xf32>
    %82 = arith.negf %81 : vector<2x32xf32>
    %83 = math.exp %82 : vector<2x32xf32>
    %cst_37 = arith.constant 1.000000e+00 : f32
    %84 = vector.broadcast %cst_37 : f32 to vector<2x32xf32>
    %85 = arith.addf %84, %83 : vector<2x32xf32>
    %86 = arith.divf %84, %85 : vector<2x32xf32>
    %87 = vector.extract_strided_slice %80 {offsets = [0, 32], sizes = [2, 32], strides = [1, 1]} : vector<2x128xf32> to vector<2x32xf32>
    %88 = arith.negf %87 : vector<2x32xf32>
    %89 = math.exp %88 : vector<2x32xf32>
    %cst_38 = arith.constant 1.000000e+00 : f32
    %90 = vector.broadcast %cst_38 : f32 to vector<2x32xf32>
    %91 = arith.addf %90, %89 : vector<2x32xf32>
    %92 = arith.divf %90, %91 : vector<2x32xf32>
    %93 = vector.extract_strided_slice %80 {offsets = [0, 64], sizes = [2, 32], strides = [1, 1]} : vector<2x128xf32> to vector<2x32xf32>
    %94 = math.tanh %93 : vector<2x32xf32>
    %95 = vector.extract_strided_slice %80 {offsets = [0, 96], sizes = [2, 32], strides = [1, 1]} : vector<2x128xf32> to vector<2x32xf32>
    %96 = arith.negf %95 : vector<2x32xf32>
    %97 = math.exp %96 : vector<2x32xf32>
    %cst_39 = arith.constant 1.000000e+00 : f32
    %98 = vector.broadcast %cst_39 : f32 to vector<2x32xf32>
    %99 = arith.addf %98, %97 : vector<2x32xf32>
    %100 = arith.divf %98, %99 : vector<2x32xf32>
    %101 = arith.mulf %92, %74 : vector<2x32xf32>
    %102 = arith.mulf %86, %94 : vector<2x32xf32>
    %103 = arith.addf %101, %102 : vector<2x32xf32>
    %104 = math.tanh %103 : vector<2x32xf32>
    %105 = arith.mulf %100, %104 : vector<2x32xf32>
    %c4_40 = arith.constant 4 : index
    %c0_41 = arith.constant 0 : index
    %106 = vector.load %arg9[%c4_40, %c0_41] : memref<16x32xf32, #tpu.memory_space<vmem>>, vector<2x32xf32>
    tpu.vector_store %arg9[%c4_40, %c0_41], %105 {strides = array<i32>} : memref<16x32xf32, #tpu.memory_space<vmem>>, vector<2x32xf32>,
    %c6 = arith.constant 6 : index
    %c0_42 = arith.constant 0 : index
    %107 = vector.load %arg12[%c6, %c0_42] : memref<16x128xf32, #tpu.memory_space<vmem>>, vector<2x128xf32>
    %cst_43 = arith.constant dense<0.000000e+00> : vector<2x128xf32>
    %108 = tpu.matmul %105, %17, %cst_43 {dimension_numbers = #tpu.dot_dimension_numbers<[1], [0], [0], [1], [0, 0, 1, 1], [], []>} : vector<2x32xf32>, vector<32x128xf32>, vector<2x128xf32> -> vector<2x128xf32>
    %109 = arith.addf %107, %108 : vector<2x128xf32>
    %110 = vector.extract_strided_slice %109 {offsets = [0, 0], sizes = [2, 32], strides = [1, 1]} : vector<2x128xf32> to vector<2x32xf32>
    %111 = arith.negf %110 : vector<2x32xf32>
    %112 = math.exp %111 : vector<2x32xf32>
    %cst_44 = arith.constant 1.000000e+00 : f32
    %113 = vector.broadcast %cst_44 : f32 to vector<2x32xf32>
    %114 = arith.addf %113, %112 : vector<2x32xf32>
    %115 = arith.divf %113, %114 : vector<2x32xf32>
    %116 = vector.extract_strided_slice %109 {offsets = [0, 32], sizes = [2, 32], strides = [1, 1]} : vector<2x128xf32> to vector<2x32xf32>
    %117 = arith.negf %116 : vector<2x32xf32>
    %118 = math.exp %117 : vector<2x32xf32>
    %cst_45 = arith.constant 1.000000e+00 : f32
    %119 = vector.broadcast %cst_45 : f32 to vector<2x32xf32>
    %120 = arith.addf %119, %118 : vector<2x32xf32>
    %121 = arith.divf %119, %120 : vector<2x32xf32>
    %122 = vector.extract_strided_slice %109 {offsets = [0, 64], sizes = [2, 32], strides = [1, 1]} : vector<2x128xf32> to vector<2x32xf32>
    %123 = math.tanh %122 : vector<2x32xf32>
    %124 = vector.extract_strided_slice %109 {offsets = [0, 96], sizes = [2, 32], strides = [1, 1]} : vector<2x128xf32> to vector<2x32xf32>
    %125 = arith.negf %124 : vector<2x32xf32>
    %126 = math.exp %125 : vector<2x32xf32>
    %cst_46 = arith.constant 1.000000e+00 : f32
    %127 = vector.broadcast %cst_46 : f32 to vector<2x32xf32>
    %128 = arith.addf %127, %126 : vector<2x32xf32>
    %129 = arith.divf %127, %128 : vector<2x32xf32>
    %130 = arith.mulf %121, %103 : vector<2x32xf32>
    %131 = arith.mulf %115, %123 : vector<2x32xf32>
    %132 = arith.addf %130, %131 : vector<2x32xf32>
    %133 = math.tanh %132 : vector<2x32xf32>
    %134 = arith.mulf %129, %133 : vector<2x32xf32>
    %c6_47 = arith.constant 6 : index
    %c0_48 = arith.constant 0 : index
    %135 = vector.load %arg9[%c6_47, %c0_48] : memref<16x32xf32, #tpu.memory_space<vmem>>, vector<2x32xf32>
    tpu.vector_store %arg9[%c6_47, %c0_48], %134 {strides = array<i32>} : memref<16x32xf32, #tpu.memory_space<vmem>>, vector<2x32xf32>,
    %c8 = arith.constant 8 : index
    %c0_49 = arith.constant 0 : index
    %136 = vector.load %arg12[%c8, %c0_49] : memref<16x128xf32, #tpu.memory_space<vmem>>, vector<2x128xf32>
    %cst_50 = arith.constant dense<0.000000e+00> : vector<2x128xf32>
    %137 = tpu.matmul %134, %17, %cst_50 {dimension_numbers = #tpu.dot_dimension_numbers<[1], [0], [0], [1], [0, 0, 1, 1], [], []>} : vector<2x32xf32>, vector<32x128xf32>, vector<2x128xf32> -> vector<2x128xf32>
    %138 = arith.addf %136, %137 : vector<2x128xf32>
    %139 = vector.extract_strided_slice %138 {offsets = [0, 0], sizes = [2, 32], strides = [1, 1]} : vector<2x128xf32> to vector<2x32xf32>
    %140 = arith.negf %139 : vector<2x32xf32>
    %141 = math.exp %140 : vector<2x32xf32>
    %cst_51 = arith.constant 1.000000e+00 : f32
    %142 = vector.broadcast %cst_51 : f32 to vector<2x32xf32>
    %143 = arith.addf %142, %141 : vector<2x32xf32>
    %144 = arith.divf %142, %143 : vector<2x32xf32>
    %145 = vector.extract_strided_slice %138 {offsets = [0, 32], sizes = [2, 32], strides = [1, 1]} : vector<2x128xf32> to vector<2x32xf32>
    %146 = arith.negf %145 : vector<2x32xf32>
    %147 = math.exp %146 : vector<2x32xf32>
    %cst_52 = arith.constant 1.000000e+00 : f32
    %148 = vector.broadcast %cst_52 : f32 to vector<2x32xf32>
    %149 = arith.addf %148, %147 : vector<2x32xf32>
    %150 = arith.divf %148, %149 : vector<2x32xf32>
    %151 = vector.extract_strided_slice %138 {offsets = [0, 64], sizes = [2, 32], strides = [1, 1]} : vector<2x128xf32> to vector<2x32xf32>
    %152 = math.tanh %151 : vector<2x32xf32>
    %153 = vector.extract_strided_slice %138 {offsets = [0, 96], sizes = [2, 32], strides = [1, 1]} : vector<2x128xf32> to vector<2x32xf32>
    %154 = arith.negf %153 : vector<2x32xf32>
    %155 = math.exp %154 : vector<2x32xf32>
    %cst_53 = arith.constant 1.000000e+00 : f32
    %156 = vector.broadcast %cst_53 : f32 to vector<2x32xf32>
    %157 = arith.addf %156, %155 : vector<2x32xf32>
    %158 = arith.divf %156, %157 : vector<2x32xf32>
    %159 = arith.mulf %150, %132 : vector<2x32xf32>
    %160 = arith.mulf %144, %152 : vector<2x32xf32>
    %161 = arith.addf %159, %160 : vector<2x32xf32>
    %162 = math.tanh %161 : vector<2x32xf32>
    %163 = arith.mulf %158, %162 : vector<2x32xf32>
    %c8_54 = arith.constant 8 : index
    %c0_55 = arith.constant 0 : index
    %164 = vector.load %arg9[%c8_54, %c0_55] : memref<16x32xf32, #tpu.memory_space<vmem>>, vector<2x32xf32>
    tpu.vector_store %arg9[%c8_54, %c0_55], %163 {strides = array<i32>} : memref<16x32xf32, #tpu.memory_space<vmem>>, vector<2x32xf32>,
    %c10 = arith.constant 10 : index
    %c0_56 = arith.constant 0 : index
    %165 = vector.load %arg12[%c10, %c0_56] : memref<16x128xf32, #tpu.memory_space<vmem>>, vector<2x128xf32>
    %cst_57 = arith.constant dense<0.000000e+00> : vector<2x128xf32>
    %166 = tpu.matmul %163, %17, %cst_57 {dimension_numbers = #tpu.dot_dimension_numbers<[1], [0], [0], [1], [0, 0, 1, 1], [], []>} : vector<2x32xf32>, vector<32x128xf32>, vector<2x128xf32> -> vector<2x128xf32>
    %167 = arith.addf %165, %166 : vector<2x128xf32>
    %168 = vector.extract_strided_slice %167 {offsets = [0, 0], sizes = [2, 32], strides = [1, 1]} : vector<2x128xf32> to vector<2x32xf32>
    %169 = arith.negf %168 : vector<2x32xf32>
    %170 = math.exp %169 : vector<2x32xf32>
    %cst_58 = arith.constant 1.000000e+00 : f32
    %171 = vector.broadcast %cst_58 : f32 to vector<2x32xf32>
    %172 = arith.addf %171, %170 : vector<2x32xf32>
    %173 = arith.divf %171, %172 : vector<2x32xf32>
    %174 = vector.extract_strided_slice %167 {offsets = [0, 32], sizes = [2, 32], strides = [1, 1]} : vector<2x128xf32> to vector<2x32xf32>
    %175 = arith.negf %174 : vector<2x32xf32>
    %176 = math.exp %175 : vector<2x32xf32>
    %cst_59 = arith.constant 1.000000e+00 : f32
    %177 = vector.broadcast %cst_59 : f32 to vector<2x32xf32>
    %178 = arith.addf %177, %176 : vector<2x32xf32>
    %179 = arith.divf %177, %178 : vector<2x32xf32>
    %180 = vector.extract_strided_slice %167 {offsets = [0, 64], sizes = [2, 32], strides = [1, 1]} : vector<2x128xf32> to vector<2x32xf32>
    %181 = math.tanh %180 : vector<2x32xf32>
    %182 = vector.extract_strided_slice %167 {offsets = [0, 96], sizes = [2, 32], strides = [1, 1]} : vector<2x128xf32> to vector<2x32xf32>
    %183 = arith.negf %182 : vector<2x32xf32>
    %184 = math.exp %183 : vector<2x32xf32>
    %cst_60 = arith.constant 1.000000e+00 : f32
    %185 = vector.broadcast %cst_60 : f32 to vector<2x32xf32>
    %186 = arith.addf %185, %184 : vector<2x32xf32>
    %187 = arith.divf %185, %186 : vector<2x32xf32>
    %188 = arith.mulf %179, %161 : vector<2x32xf32>
    %189 = arith.mulf %173, %181 : vector<2x32xf32>
    %190 = arith.addf %188, %189 : vector<2x32xf32>
    %191 = math.tanh %190 : vector<2x32xf32>
    %192 = arith.mulf %187, %191 : vector<2x32xf32>
    %c10_61 = arith.constant 10 : index
    %c0_62 = arith.constant 0 : index
    %193 = vector.load %arg9[%c10_61, %c0_62] : memref<16x32xf32, #tpu.memory_space<vmem>>, vector<2x32xf32>
    tpu.vector_store %arg9[%c10_61, %c0_62], %192 {strides = array<i32>} : memref<16x32xf32, #tpu.memory_space<vmem>>, vector<2x32xf32>,
    %c12 = arith.constant 12 : index
    %c0_63 = arith.constant 0 : index
    %194 = vector.load %arg12[%c12, %c0_63] : memref<16x128xf32, #tpu.memory_space<vmem>>, vector<2x128xf32>
    %cst_64 = arith.constant dense<0.000000e+00> : vector<2x128xf32>
    %195 = tpu.matmul %192, %17, %cst_64 {dimension_numbers = #tpu.dot_dimension_numbers<[1], [0], [0], [1], [0, 0, 1, 1], [], []>} : vector<2x32xf32>, vector<32x128xf32>, vector<2x128xf32> -> vector<2x128xf32>
    %196 = arith.addf %194, %195 : vector<2x128xf32>
    %197 = vector.extract_strided_slice %196 {offsets = [0, 0], sizes = [2, 32], strides = [1, 1]} : vector<2x128xf32> to vector<2x32xf32>
    %198 = arith.negf %197 : vector<2x32xf32>
    %199 = math.exp %198 : vector<2x32xf32>
    %cst_65 = arith.constant 1.000000e+00 : f32
    %200 = vector.broadcast %cst_65 : f32 to vector<2x32xf32>
    %201 = arith.addf %200, %199 : vector<2x32xf32>
    %202 = arith.divf %200, %201 : vector<2x32xf32>
    %203 = vector.extract_strided_slice %196 {offsets = [0, 32], sizes = [2, 32], strides = [1, 1]} : vector<2x128xf32> to vector<2x32xf32>
    %204 = arith.negf %203 : vector<2x32xf32>
    %205 = math.exp %204 : vector<2x32xf32>
    %cst_66 = arith.constant 1.000000e+00 : f32
    %206 = vector.broadcast %cst_66 : f32 to vector<2x32xf32>
    %207 = arith.addf %206, %205 : vector<2x32xf32>
    %208 = arith.divf %206, %207 : vector<2x32xf32>
    %209 = vector.extract_strided_slice %196 {offsets = [0, 64], sizes = [2, 32], strides = [1, 1]} : vector<2x128xf32> to vector<2x32xf32>
    %210 = math.tanh %209 : vector<2x32xf32>
    %211 = vector.extract_strided_slice %196 {offsets = [0, 96], sizes = [2, 32], strides = [1, 1]} : vector<2x128xf32> to vector<2x32xf32>
    %212 = arith.negf %211 : vector<2x32xf32>
    %213 = math.exp %212 : vector<2x32xf32>
    %cst_67 = arith.constant 1.000000e+00 : f32
    %214 = vector.broadcast %cst_67 : f32 to vector<2x32xf32>
    %215 = arith.addf %214, %213 : vector<2x32xf32>
    %216 = arith.divf %214, %215 : vector<2x32xf32>
    %217 = arith.mulf %208, %190 : vector<2x32xf32>
    %218 = arith.mulf %202, %210 : vector<2x32xf32>
    %219 = arith.addf %217, %218 : vector<2x32xf32>
    %220 = math.tanh %219 : vector<2x32xf32>
    %221 = arith.mulf %216, %220 : vector<2x32xf32>
    %c12_68 = arith.constant 12 : index
    %c0_69 = arith.constant 0 : index
    %222 = vector.load %arg9[%c12_68, %c0_69] : memref<16x32xf32, #tpu.memory_space<vmem>>, vector<2x32xf32>
    tpu.vector_store %arg9[%c12_68, %c0_69], %221 {strides = array<i32>} : memref<16x32xf32, #tpu.memory_space<vmem>>, vector<2x32xf32>,
    %c14 = arith.constant 14 : index
    %c0_70 = arith.constant 0 : index
    %223 = vector.load %arg12[%c14, %c0_70] : memref<16x128xf32, #tpu.memory_space<vmem>>, vector<2x128xf32>
    %cst_71 = arith.constant dense<0.000000e+00> : vector<2x128xf32>
    %224 = tpu.matmul %221, %17, %cst_71 {dimension_numbers = #tpu.dot_dimension_numbers<[1], [0], [0], [1], [0, 0, 1, 1], [], []>} : vector<2x32xf32>, vector<32x128xf32>, vector<2x128xf32> -> vector<2x128xf32>
    %225 = arith.addf %223, %224 : vector<2x128xf32>
    %226 = vector.extract_strided_slice %225 {offsets = [0, 0], sizes = [2, 32], strides = [1, 1]} : vector<2x128xf32> to vector<2x32xf32>
    %227 = arith.negf %226 : vector<2x32xf32>
    %228 = math.exp %227 : vector<2x32xf32>
    %cst_72 = arith.constant 1.000000e+00 : f32
    %229 = vector.broadcast %cst_72 : f32 to vector<2x32xf32>
    %230 = arith.addf %229, %228 : vector<2x32xf32>
    %231 = arith.divf %229, %230 : vector<2x32xf32>
    %232 = vector.extract_strided_slice %225 {offsets = [0, 32], sizes = [2, 32], strides = [1, 1]} : vector<2x128xf32> to vector<2x32xf32>
    %233 = arith.negf %232 : vector<2x32xf32>
    %234 = math.exp %233 : vector<2x32xf32>
    %cst_73 = arith.constant 1.000000e+00 : f32
    %235 = vector.broadcast %cst_73 : f32 to vector<2x32xf32>
    %236 = arith.addf %235, %234 : vector<2x32xf32>
    %237 = arith.divf %235, %236 : vector<2x32xf32>
    %238 = vector.extract_strided_slice %225 {offsets = [0, 64], sizes = [2, 32], strides = [1, 1]} : vector<2x128xf32> to vector<2x32xf32>
    %239 = math.tanh %238 : vector<2x32xf32>
    %240 = vector.extract_strided_slice %225 {offsets = [0, 96], sizes = [2, 32], strides = [1, 1]} : vector<2x128xf32> to vector<2x32xf32>
    %241 = arith.negf %240 : vector<2x32xf32>
    %242 = math.exp %241 : vector<2x32xf32>
    %cst_74 = arith.constant 1.000000e+00 : f32
    %243 = vector.broadcast %cst_74 : f32 to vector<2x32xf32>
    %244 = arith.addf %243, %242 : vector<2x32xf32>
    %245 = arith.divf %243, %244 : vector<2x32xf32>
    %246 = arith.mulf %237, %219 : vector<2x32xf32>
    %247 = arith.mulf %231, %239 : vector<2x32xf32>
    %248 = arith.addf %246, %247 : vector<2x32xf32>
    %249 = math.tanh %248 : vector<2x32xf32>
    %250 = arith.mulf %245, %249 : vector<2x32xf32>
    %c14_75 = arith.constant 14 : index
    %c0_76 = arith.constant 0 : index
    %251 = vector.load %arg9[%c14_75, %c0_76] : memref<16x32xf32, #tpu.memory_space<vmem>>, vector<2x32xf32>
    tpu.vector_store %arg9[%c14_75, %c0_76], %250 {strides = array<i32>} : memref<16x32xf32, #tpu.memory_space<vmem>>, vector<2x32xf32>,
    %c0_77 = arith.constant 0 : index
    %c0_78 = arith.constant 0 : index
    %252 = vector.load %arg13[%c0_77, %c0_78] : memref<2x32xf32, #tpu.memory_space<vmem>>, vector<2x32xf32>
    tpu.vector_store %arg13[%c0_77, %c0_78], %250 {strides = array<i32>} : memref<2x32xf32, #tpu.memory_space<vmem>>, vector<2x32xf32>,
    %c0_79 = arith.constant 0 : index
    %c0_80 = arith.constant 0 : index
    %253 = vector.load %arg14[%c0_79, %c0_80] : memref<2x32xf32, #tpu.memory_space<vmem>>, vector<2x32xf32>
    tpu.vector_store %arg14[%c0_79, %c0_80], %248 {strides = array<i32>} : memref<2x32xf32, #tpu.memory_space<vmem>>, vector<2x32xf32>,
    %c0_i32_81 = arith.constant 0 : i32
    %254 = arith.cmpi eq, %arg0, %c0_i32_81 : i32
    %255 = arith.extui %254 : i1 to i32
    %c0_i32_82 = arith.constant 0 : i32
    %256 = arith.cmpi ne, %255, %c0_i32_82 : i32
    scf.if %256 {
      %c0_83 = arith.constant 0 : index
      %c0_84 = arith.constant 0 : index
      %257 = vector.load %arg10[%c0_83, %c0_84] : memref<2x32xf32, #tpu.memory_space<vmem>>, vector<2x32xf32>
      tpu.vector_store %arg10[%c0_83, %c0_84], %250 {strides = array<i32>} : memref<2x32xf32, #tpu.memory_space<vmem>>, vector<2x32xf32>,
      %c0_85 = arith.constant 0 : index
      %c0_86 = arith.constant 0 : index
      %258 = vector.load %arg11[%c0_85, %c0_86] : memref<2x32xf32, #tpu.memory_space<vmem>>, vector<2x32xf32>
      tpu.vector_store %arg11[%c0_85, %c0_86], %248 {strides = array<i32>} : memref<2x32xf32, #tpu.memory_space<vmem>>, vector<2x32xf32>,
    } else {
    }
    return
  }
  func.func @transform_0(%arg0: i32) -> (i32, i32) {
    %c0_i32 = arith.constant 0 : i32
    %c0_i32_0 = arith.constant 0 : i32
    return %arg0, %c0_i32 : i32, i32
  }
  func.func @transform_1(%arg0: i32) -> (i32, i32) {
    %c0_i32 = arith.constant 0 : i32
    %c0_i32_0 = arith.constant 0 : i32
    %c0_i32_1 = arith.constant 0 : i32
    return %c0_i32, %c0_i32_0 : i32, i32
  }
  func.func @transform_2(%arg0: i32) -> (i32, i32) {
    %c0_i32 = arith.constant 0 : i32
    %c0_i32_0 = arith.constant 0 : i32
    %c0_i32_1 = arith.constant 0 : i32
    return %c0_i32, %c0_i32_0 : i32, i32
  }
  func.func @transform_3(%arg0: i32) -> (i32, i32) {
    %c0_i32 = arith.constant 0 : i32
    %c0_i32_0 = arith.constant 0 : i32
    %c0_i32_1 = arith.constant 0 : i32
    return %c0_i32, %c0_i32_0 : i32, i32
  }
  func.func @transform_4(%arg0: i32) -> (i32, i32) {
    %c0_i32 = arith.constant 0 : i32
    %c0_i32_0 = arith.constant 0 : i32
    %c0_i32_1 = arith.constant 0 : i32
    return %c0_i32, %c0_i32_0 : i32, i32
  }
  func.func @transform_5(%arg0: i32) -> (i32, i32) {
    %c0_i32 = arith.constant 0 : i32
    %c0_i32_0 = arith.constant 0 : i32
    %c0_i32_1 = arith.constant 0 : i32
    return %c0_i32, %c0_i32_0 : i32, i32
  }
  func.func @transform_6(%arg0: i32) -> (i32, i32) {
    %c0_i32 = arith.constant 0 : i32
    %c0_i32_0 = arith.constant 0 : i32
    %c0_i32_1 = arith.constant 0 : i32
    return %c0_i32, %c0_i32_0 : i32, i32
  }
  func.func @transform_7(%arg0: i32) -> (i32, i32) {
    %c0_i32 = arith.constant 0 : i32
    %c0_i32_0 = arith.constant 0 : i32
    %c0_i32_1 = arith.constant 0 : i32
    return %c0_i32, %c0_i32_0 : i32, i32
  }
  func.func @transform_8(%arg0: i32) -> (i32, i32) {
    %c0_i32 = arith.constant 0 : i32
    %c0_i32_0 = arith.constant 0 : i32
    return %arg0, %c0_i32 : i32, i32
  }
  func.func @transform_9(%arg0: i32) -> (i32, i32) {
    %c0_i32 = arith.constant 0 : i32
    %c0_i32_0 = arith.constant 0 : i32
    %c0_i32_1 = arith.constant 0 : i32
    return %c0_i32, %c0_i32_0 : i32, i32
  }
  func.func @transform_10(%arg0: i32) -> (i32, i32) {
    %c0_i32 = arith.constant 0 : i32
    %c0_i32_0 = arith.constant 0 : i32
    %c0_i32_1 = arith.constant 0 : i32
    return %c0_i32, %c0_i32_0 : i32, i32
  }
}

module attributes {stable_mosaic.version = 11 : i64} {
  func.func @kernel(%arg0: i32, %arg1: memref<16x32xf32, #tpu.memory_space<vmem>>, %arg2: memref<32x128xf32, #tpu.memory_space<vmem>>, %arg3: memref<1x128xf32, #tpu.memory_space<vmem>>, %arg4: memref<32x128xf32, #tpu.memory_space<vmem>>, %arg5: memref<2x32xf32, #tpu.memory_space<vmem>>, %arg6: memref<2x32xf32, #tpu.memory_space<vmem>>, %arg7: memref<32x4xf32, #tpu.memory_space<vmem>>, %arg8: memref<1x4xf32, #tpu.memory_space<vmem>>, %arg9: memref<16x4xf32, #tpu.memory_space<vmem>>, %arg10: memref<2x32xf32, #tpu.memory_space<vmem>>, %arg11: memref<2x32xf32, #tpu.memory_space<vmem>>, %arg12: memref<16x128xf32, #tpu.memory_space<vmem>>, %arg13: memref<2x32xf32, #tpu.memory_space<vmem>>, %arg14: memref<2x32xf32, #tpu.memory_space<vmem>>, %arg15: memref<16x32xf32, #tpu.memory_space<vmem>>) attributes {dimension_semantics = [#tpu.dimension_semantics<arbitrary>], iteration_bounds = array<i64: 1>, scalar_prefetch = 0 : i64, scratch_operands = 4 : i64, tpu.core_type = #tpu.core_type<tc>, window_params = [{transform_indices = @transform_0, window_bounds = array<i64: 16, 32>}, {pipeline_mode = #tpu.pipeline_mode<synchronous>, transform_indices = @transform_1, window_bounds = array<i64: 32, 128>}, {pipeline_mode = #tpu.pipeline_mode<synchronous>, transform_indices = @transform_2, window_bounds = array<i64: 1, 128>}, {pipeline_mode = #tpu.pipeline_mode<synchronous>, transform_indices = @transform_3, window_bounds = array<i64: 32, 128>}, {pipeline_mode = #tpu.pipeline_mode<synchronous>, transform_indices = @transform_4, window_bounds = array<i64: 2, 32>}, {pipeline_mode = #tpu.pipeline_mode<synchronous>, transform_indices = @transform_5, window_bounds = array<i64: 2, 32>}, {pipeline_mode = #tpu.pipeline_mode<synchronous>, transform_indices = @transform_6, window_bounds = array<i64: 32, 4>}, {pipeline_mode = #tpu.pipeline_mode<synchronous>, transform_indices = @transform_7, window_bounds = array<i64: 1, 4>}, {transform_indices = @transform_8, window_bounds = array<i64: 16, 4>}, {pipeline_mode = #tpu.pipeline_mode<synchronous>, transform_indices = @transform_9, window_bounds = array<i64: 2, 32>}, {pipeline_mode = #tpu.pipeline_mode<synchronous>, transform_indices = @transform_10, window_bounds = array<i64: 2, 32>}]} {
    %c0_i32 = arith.constant 0 : i32
    %0 = arith.cmpi eq, %arg0, %c0_i32 : i32
    %1 = arith.extui %0 : i1 to i32
    %c0_i32_0 = arith.constant 0 : i32
    %2 = arith.cmpi ne, %1, %c0_i32_0 : i32
    scf.if %2 {
      %c0_87 = arith.constant 0 : index
      %c0_88 = arith.constant 0 : index
      %259 = vector.load %arg5[%c0_87, %c0_88] : memref<2x32xf32, #tpu.memory_space<vmem>>, vector<2x32xf32>
      %c0_89 = arith.constant 0 : index
      %c0_90 = arith.constant 0 : index
      %260 = vector.load %arg13[%c0_89, %c0_90] : memref<2x32xf32, #tpu.memory_space<vmem>>, vector<2x32xf32>
      tpu.vector_store %arg13[%c0_89, %c0_90], %259 {strides = array<i32>} : memref<2x32xf32, #tpu.memory_space<vmem>>, vector<2x32xf32>,
      %c0_91 = arith.constant 0 : index
      %c0_92 = arith.constant 0 : index
      %261 = vector.load %arg6[%c0_91, %c0_92] : memref<2x32xf32, #tpu.memory_space<vmem>>, vector<2x32xf32>
      %c0_93 = arith.constant 0 : index
      %c0_94 = arith.constant 0 : index
      %262 = vector.load %arg14[%c0_93, %c0_94] : memref<2x32xf32, #tpu.memory_space<vmem>>, vector<2x32xf32>
      tpu.vector_store %arg14[%c0_93, %c0_94], %261 {strides = array<i32>} : memref<2x32xf32, #tpu.memory_space<vmem>>, vector<2x32xf32>,
    } else {
    }
    %c0 = arith.constant 0 : index
    %c0_1 = arith.constant 0 : index
    %3 = vector.load %arg1[%c0, %c0_1] : memref<16x32xf32, #tpu.memory_space<vmem>>, vector<16x32xf32>
    %c0_2 = arith.constant 0 : index
    %c0_3 = arith.constant 0 : index
    %4 = vector.load %arg2[%c0_2, %c0_3] : memref<32x128xf32, #tpu.memory_space<vmem>>, vector<32x128xf32>
    %cst = arith.constant dense<0.000000e+00> : vector<16x128xf32>
    %5 = tpu.matmul %3, %4, %cst {dimension_numbers = #tpu.dot_dimension_numbers<[1], [0], [0], [1], [0, 0, 1, 1], [], []>} : vector<16x32xf32>, vector<32x128xf32>, vector<16x128xf32> -> vector<16x128xf32>
    %c0_4 = arith.constant 0 : index
    %c0_5 = arith.constant 0 : index
    %6 = vector.load %arg3[%c0_4, %c0_5] : memref<1x128xf32, #tpu.memory_space<vmem>>, vector<1x128xf32>
    %7 = vector.broadcast %6 : vector<1x128xf32> to vector<16x128xf32>
    %8 = arith.addf %5, %7 : vector<16x128xf32>
    %c0_6 = arith.constant 0 : index
    %c0_7 = arith.constant 0 : index
    %9 = vector.load %arg12[%c0_6, %c0_7] : memref<16x128xf32, #tpu.memory_space<vmem>>, vector<16x128xf32>
    tpu.vector_store %arg12[%c0_6, %c0_7], %8 {strides = array<i32>} : memref<16x128xf32, #tpu.memory_space<vmem>>, vector<16x128xf32>,
    %c0_8 = arith.constant 0 : index
    %c0_9 = arith.constant 0 : index
    %10 = vector.load %arg4[%c0_8, %c0_9] : memref<32x128xf32, #tpu.memory_space<vmem>>, vector<32x128xf32>
    %c0_10 = arith.constant 0 : index
    %c0_11 = arith.constant 0 : index
    %11 = vector.load %arg13[%c0_10, %c0_11] : memref<2x32xf32, #tpu.memory_space<vmem>>, vector<2x32xf32>
    %c0_12 = arith.constant 0 : index
    %c0_13 = arith.constant 0 : index
    %12 = vector.load %arg14[%c0_12, %c0_13] : memref<2x32xf32, #tpu.memory_space<vmem>>, vector<2x32xf32>
    %c0_14 = arith.constant 0 : index
    %c0_15 = arith.constant 0 : index
    %13 = vector.load %arg12[%c0_14, %c0_15] : memref<16x128xf32, #tpu.memory_space<vmem>>, vector<2x128xf32>
    %cst_16 = arith.constant dense<0.000000e+00> : vector<2x128xf32>
    %14 = tpu.matmul %11, %10, %cst_16 {dimension_numbers = #tpu.dot_dimension_numbers<[1], [0], [0], [1], [0, 0, 1, 1], [], []>} : vector<2x32xf32>, vector<32x128xf32>, vector<2x128xf32> -> vector<2x128xf32>
    %15 = arith.addf %13, %14 : vector<2x128xf32>
    %16 = vector.extract_strided_slice %15 {offsets = [0, 0], sizes = [2, 32], strides = [1, 1]} : vector<2x128xf32> to vector<2x32xf32>
    %17 = arith.negf %16 : vector<2x32xf32>
    %18 = math.exp %17 : vector<2x32xf32>
    %cst_17 = arith.constant 1.000000e+00 : f32
    %19 = vector.broadcast %cst_17 : f32 to vector<2x32xf32>
    %20 = arith.addf %19, %18 : vector<2x32xf32>
    %21 = arith.divf %19, %20 : vector<2x32xf32>
    %22 = vector.extract_strided_slice %15 {offsets = [0, 32], sizes = [2, 32], strides = [1, 1]} : vector<2x128xf32> to vector<2x32xf32>
    %23 = arith.negf %22 : vector<2x32xf32>
    %24 = math.exp %23 : vector<2x32xf32>
    %cst_18 = arith.constant 1.000000e+00 : f32
    %25 = vector.broadcast %cst_18 : f32 to vector<2x32xf32>
    %26 = arith.addf %25, %24 : vector<2x32xf32>
    %27 = arith.divf %25, %26 : vector<2x32xf32>
    %28 = vector.extract_strided_slice %15 {offsets = [0, 64], sizes = [2, 32], strides = [1, 1]} : vector<2x128xf32> to vector<2x32xf32>
    %29 = math.tanh %28 : vector<2x32xf32>
    %30 = vector.extract_strided_slice %15 {offsets = [0, 96], sizes = [2, 32], strides = [1, 1]} : vector<2x128xf32> to vector<2x32xf32>
    %31 = arith.negf %30 : vector<2x32xf32>
    %32 = math.exp %31 : vector<2x32xf32>
    %cst_19 = arith.constant 1.000000e+00 : f32
    %33 = vector.broadcast %cst_19 : f32 to vector<2x32xf32>
    %34 = arith.addf %33, %32 : vector<2x32xf32>
    %35 = arith.divf %33, %34 : vector<2x32xf32>
    %36 = arith.mulf %27, %12 : vector<2x32xf32>
    %37 = arith.mulf %21, %29 : vector<2x32xf32>
    %38 = arith.addf %36, %37 : vector<2x32xf32>
    %39 = math.tanh %38 : vector<2x32xf32>
    %40 = arith.mulf %35, %39 : vector<2x32xf32>
    %c0_20 = arith.constant 0 : index
    %c0_21 = arith.constant 0 : index
    %41 = vector.load %arg15[%c0_20, %c0_21] : memref<16x32xf32, #tpu.memory_space<vmem>>, vector<2x32xf32>
    tpu.vector_store %arg15[%c0_20, %c0_21], %40 {strides = array<i32>} : memref<16x32xf32, #tpu.memory_space<vmem>>, vector<2x32xf32>,
    %c2 = arith.constant 2 : index
    %c0_22 = arith.constant 0 : index
    %42 = vector.load %arg12[%c2, %c0_22] : memref<16x128xf32, #tpu.memory_space<vmem>>, vector<2x128xf32>
    %cst_23 = arith.constant dense<0.000000e+00> : vector<2x128xf32>
    %43 = tpu.matmul %40, %10, %cst_23 {dimension_numbers = #tpu.dot_dimension_numbers<[1], [0], [0], [1], [0, 0, 1, 1], [], []>} : vector<2x32xf32>, vector<32x128xf32>, vector<2x128xf32> -> vector<2x128xf32>
    %44 = arith.addf %42, %43 : vector<2x128xf32>
    %45 = vector.extract_strided_slice %44 {offsets = [0, 0], sizes = [2, 32], strides = [1, 1]} : vector<2x128xf32> to vector<2x32xf32>
    %46 = arith.negf %45 : vector<2x32xf32>
    %47 = math.exp %46 : vector<2x32xf32>
    %cst_24 = arith.constant 1.000000e+00 : f32
    %48 = vector.broadcast %cst_24 : f32 to vector<2x32xf32>
    %49 = arith.addf %48, %47 : vector<2x32xf32>
    %50 = arith.divf %48, %49 : vector<2x32xf32>
    %51 = vector.extract_strided_slice %44 {offsets = [0, 32], sizes = [2, 32], strides = [1, 1]} : vector<2x128xf32> to vector<2x32xf32>
    %52 = arith.negf %51 : vector<2x32xf32>
    %53 = math.exp %52 : vector<2x32xf32>
    %cst_25 = arith.constant 1.000000e+00 : f32
    %54 = vector.broadcast %cst_25 : f32 to vector<2x32xf32>
    %55 = arith.addf %54, %53 : vector<2x32xf32>
    %56 = arith.divf %54, %55 : vector<2x32xf32>
    %57 = vector.extract_strided_slice %44 {offsets = [0, 64], sizes = [2, 32], strides = [1, 1]} : vector<2x128xf32> to vector<2x32xf32>
    %58 = math.tanh %57 : vector<2x32xf32>
    %59 = vector.extract_strided_slice %44 {offsets = [0, 96], sizes = [2, 32], strides = [1, 1]} : vector<2x128xf32> to vector<2x32xf32>
    %60 = arith.negf %59 : vector<2x32xf32>
    %61 = math.exp %60 : vector<2x32xf32>
    %cst_26 = arith.constant 1.000000e+00 : f32
    %62 = vector.broadcast %cst_26 : f32 to vector<2x32xf32>
    %63 = arith.addf %62, %61 : vector<2x32xf32>
    %64 = arith.divf %62, %63 : vector<2x32xf32>
    %65 = arith.mulf %56, %38 : vector<2x32xf32>
    %66 = arith.mulf %50, %58 : vector<2x32xf32>
    %67 = arith.addf %65, %66 : vector<2x32xf32>
    %68 = math.tanh %67 : vector<2x32xf32>
    %69 = arith.mulf %64, %68 : vector<2x32xf32>
    %c2_27 = arith.constant 2 : index
    %c0_28 = arith.constant 0 : index
    %70 = vector.load %arg15[%c2_27, %c0_28] : memref<16x32xf32, #tpu.memory_space<vmem>>, vector<2x32xf32>
    tpu.vector_store %arg15[%c2_27, %c0_28], %69 {strides = array<i32>} : memref<16x32xf32, #tpu.memory_space<vmem>>, vector<2x32xf32>,
    %c4 = arith.constant 4 : index
    %c0_29 = arith.constant 0 : index
    %71 = vector.load %arg12[%c4, %c0_29] : memref<16x128xf32, #tpu.memory_space<vmem>>, vector<2x128xf32>
    %cst_30 = arith.constant dense<0.000000e+00> : vector<2x128xf32>
    %72 = tpu.matmul %69, %10, %cst_30 {dimension_numbers = #tpu.dot_dimension_numbers<[1], [0], [0], [1], [0, 0, 1, 1], [], []>} : vector<2x32xf32>, vector<32x128xf32>, vector<2x128xf32> -> vector<2x128xf32>
    %73 = arith.addf %71, %72 : vector<2x128xf32>
    %74 = vector.extract_strided_slice %73 {offsets = [0, 0], sizes = [2, 32], strides = [1, 1]} : vector<2x128xf32> to vector<2x32xf32>
    %75 = arith.negf %74 : vector<2x32xf32>
    %76 = math.exp %75 : vector<2x32xf32>
    %cst_31 = arith.constant 1.000000e+00 : f32
    %77 = vector.broadcast %cst_31 : f32 to vector<2x32xf32>
    %78 = arith.addf %77, %76 : vector<2x32xf32>
    %79 = arith.divf %77, %78 : vector<2x32xf32>
    %80 = vector.extract_strided_slice %73 {offsets = [0, 32], sizes = [2, 32], strides = [1, 1]} : vector<2x128xf32> to vector<2x32xf32>
    %81 = arith.negf %80 : vector<2x32xf32>
    %82 = math.exp %81 : vector<2x32xf32>
    %cst_32 = arith.constant 1.000000e+00 : f32
    %83 = vector.broadcast %cst_32 : f32 to vector<2x32xf32>
    %84 = arith.addf %83, %82 : vector<2x32xf32>
    %85 = arith.divf %83, %84 : vector<2x32xf32>
    %86 = vector.extract_strided_slice %73 {offsets = [0, 64], sizes = [2, 32], strides = [1, 1]} : vector<2x128xf32> to vector<2x32xf32>
    %87 = math.tanh %86 : vector<2x32xf32>
    %88 = vector.extract_strided_slice %73 {offsets = [0, 96], sizes = [2, 32], strides = [1, 1]} : vector<2x128xf32> to vector<2x32xf32>
    %89 = arith.negf %88 : vector<2x32xf32>
    %90 = math.exp %89 : vector<2x32xf32>
    %cst_33 = arith.constant 1.000000e+00 : f32
    %91 = vector.broadcast %cst_33 : f32 to vector<2x32xf32>
    %92 = arith.addf %91, %90 : vector<2x32xf32>
    %93 = arith.divf %91, %92 : vector<2x32xf32>
    %94 = arith.mulf %85, %67 : vector<2x32xf32>
    %95 = arith.mulf %79, %87 : vector<2x32xf32>
    %96 = arith.addf %94, %95 : vector<2x32xf32>
    %97 = math.tanh %96 : vector<2x32xf32>
    %98 = arith.mulf %93, %97 : vector<2x32xf32>
    %c4_34 = arith.constant 4 : index
    %c0_35 = arith.constant 0 : index
    %99 = vector.load %arg15[%c4_34, %c0_35] : memref<16x32xf32, #tpu.memory_space<vmem>>, vector<2x32xf32>
    tpu.vector_store %arg15[%c4_34, %c0_35], %98 {strides = array<i32>} : memref<16x32xf32, #tpu.memory_space<vmem>>, vector<2x32xf32>,
    %c6 = arith.constant 6 : index
    %c0_36 = arith.constant 0 : index
    %100 = vector.load %arg12[%c6, %c0_36] : memref<16x128xf32, #tpu.memory_space<vmem>>, vector<2x128xf32>
    %cst_37 = arith.constant dense<0.000000e+00> : vector<2x128xf32>
    %101 = tpu.matmul %98, %10, %cst_37 {dimension_numbers = #tpu.dot_dimension_numbers<[1], [0], [0], [1], [0, 0, 1, 1], [], []>} : vector<2x32xf32>, vector<32x128xf32>, vector<2x128xf32> -> vector<2x128xf32>
    %102 = arith.addf %100, %101 : vector<2x128xf32>
    %103 = vector.extract_strided_slice %102 {offsets = [0, 0], sizes = [2, 32], strides = [1, 1]} : vector<2x128xf32> to vector<2x32xf32>
    %104 = arith.negf %103 : vector<2x32xf32>
    %105 = math.exp %104 : vector<2x32xf32>
    %cst_38 = arith.constant 1.000000e+00 : f32
    %106 = vector.broadcast %cst_38 : f32 to vector<2x32xf32>
    %107 = arith.addf %106, %105 : vector<2x32xf32>
    %108 = arith.divf %106, %107 : vector<2x32xf32>
    %109 = vector.extract_strided_slice %102 {offsets = [0, 32], sizes = [2, 32], strides = [1, 1]} : vector<2x128xf32> to vector<2x32xf32>
    %110 = arith.negf %109 : vector<2x32xf32>
    %111 = math.exp %110 : vector<2x32xf32>
    %cst_39 = arith.constant 1.000000e+00 : f32
    %112 = vector.broadcast %cst_39 : f32 to vector<2x32xf32>
    %113 = arith.addf %112, %111 : vector<2x32xf32>
    %114 = arith.divf %112, %113 : vector<2x32xf32>
    %115 = vector.extract_strided_slice %102 {offsets = [0, 64], sizes = [2, 32], strides = [1, 1]} : vector<2x128xf32> to vector<2x32xf32>
    %116 = math.tanh %115 : vector<2x32xf32>
    %117 = vector.extract_strided_slice %102 {offsets = [0, 96], sizes = [2, 32], strides = [1, 1]} : vector<2x128xf32> to vector<2x32xf32>
    %118 = arith.negf %117 : vector<2x32xf32>
    %119 = math.exp %118 : vector<2x32xf32>
    %cst_40 = arith.constant 1.000000e+00 : f32
    %120 = vector.broadcast %cst_40 : f32 to vector<2x32xf32>
    %121 = arith.addf %120, %119 : vector<2x32xf32>
    %122 = arith.divf %120, %121 : vector<2x32xf32>
    %123 = arith.mulf %114, %96 : vector<2x32xf32>
    %124 = arith.mulf %108, %116 : vector<2x32xf32>
    %125 = arith.addf %123, %124 : vector<2x32xf32>
    %126 = math.tanh %125 : vector<2x32xf32>
    %127 = arith.mulf %122, %126 : vector<2x32xf32>
    %c6_41 = arith.constant 6 : index
    %c0_42 = arith.constant 0 : index
    %128 = vector.load %arg15[%c6_41, %c0_42] : memref<16x32xf32, #tpu.memory_space<vmem>>, vector<2x32xf32>
    tpu.vector_store %arg15[%c6_41, %c0_42], %127 {strides = array<i32>} : memref<16x32xf32, #tpu.memory_space<vmem>>, vector<2x32xf32>,
    %c8 = arith.constant 8 : index
    %c0_43 = arith.constant 0 : index
    %129 = vector.load %arg12[%c8, %c0_43] : memref<16x128xf32, #tpu.memory_space<vmem>>, vector<2x128xf32>
    %cst_44 = arith.constant dense<0.000000e+00> : vector<2x128xf32>
    %130 = tpu.matmul %127, %10, %cst_44 {dimension_numbers = #tpu.dot_dimension_numbers<[1], [0], [0], [1], [0, 0, 1, 1], [], []>} : vector<2x32xf32>, vector<32x128xf32>, vector<2x128xf32> -> vector<2x128xf32>
    %131 = arith.addf %129, %130 : vector<2x128xf32>
    %132 = vector.extract_strided_slice %131 {offsets = [0, 0], sizes = [2, 32], strides = [1, 1]} : vector<2x128xf32> to vector<2x32xf32>
    %133 = arith.negf %132 : vector<2x32xf32>
    %134 = math.exp %133 : vector<2x32xf32>
    %cst_45 = arith.constant 1.000000e+00 : f32
    %135 = vector.broadcast %cst_45 : f32 to vector<2x32xf32>
    %136 = arith.addf %135, %134 : vector<2x32xf32>
    %137 = arith.divf %135, %136 : vector<2x32xf32>
    %138 = vector.extract_strided_slice %131 {offsets = [0, 32], sizes = [2, 32], strides = [1, 1]} : vector<2x128xf32> to vector<2x32xf32>
    %139 = arith.negf %138 : vector<2x32xf32>
    %140 = math.exp %139 : vector<2x32xf32>
    %cst_46 = arith.constant 1.000000e+00 : f32
    %141 = vector.broadcast %cst_46 : f32 to vector<2x32xf32>
    %142 = arith.addf %141, %140 : vector<2x32xf32>
    %143 = arith.divf %141, %142 : vector<2x32xf32>
    %144 = vector.extract_strided_slice %131 {offsets = [0, 64], sizes = [2, 32], strides = [1, 1]} : vector<2x128xf32> to vector<2x32xf32>
    %145 = math.tanh %144 : vector<2x32xf32>
    %146 = vector.extract_strided_slice %131 {offsets = [0, 96], sizes = [2, 32], strides = [1, 1]} : vector<2x128xf32> to vector<2x32xf32>
    %147 = arith.negf %146 : vector<2x32xf32>
    %148 = math.exp %147 : vector<2x32xf32>
    %cst_47 = arith.constant 1.000000e+00 : f32
    %149 = vector.broadcast %cst_47 : f32 to vector<2x32xf32>
    %150 = arith.addf %149, %148 : vector<2x32xf32>
    %151 = arith.divf %149, %150 : vector<2x32xf32>
    %152 = arith.mulf %143, %125 : vector<2x32xf32>
    %153 = arith.mulf %137, %145 : vector<2x32xf32>
    %154 = arith.addf %152, %153 : vector<2x32xf32>
    %155 = math.tanh %154 : vector<2x32xf32>
    %156 = arith.mulf %151, %155 : vector<2x32xf32>
    %c8_48 = arith.constant 8 : index
    %c0_49 = arith.constant 0 : index
    %157 = vector.load %arg15[%c8_48, %c0_49] : memref<16x32xf32, #tpu.memory_space<vmem>>, vector<2x32xf32>
    tpu.vector_store %arg15[%c8_48, %c0_49], %156 {strides = array<i32>} : memref<16x32xf32, #tpu.memory_space<vmem>>, vector<2x32xf32>,
    %c10 = arith.constant 10 : index
    %c0_50 = arith.constant 0 : index
    %158 = vector.load %arg12[%c10, %c0_50] : memref<16x128xf32, #tpu.memory_space<vmem>>, vector<2x128xf32>
    %cst_51 = arith.constant dense<0.000000e+00> : vector<2x128xf32>
    %159 = tpu.matmul %156, %10, %cst_51 {dimension_numbers = #tpu.dot_dimension_numbers<[1], [0], [0], [1], [0, 0, 1, 1], [], []>} : vector<2x32xf32>, vector<32x128xf32>, vector<2x128xf32> -> vector<2x128xf32>
    %160 = arith.addf %158, %159 : vector<2x128xf32>
    %161 = vector.extract_strided_slice %160 {offsets = [0, 0], sizes = [2, 32], strides = [1, 1]} : vector<2x128xf32> to vector<2x32xf32>
    %162 = arith.negf %161 : vector<2x32xf32>
    %163 = math.exp %162 : vector<2x32xf32>
    %cst_52 = arith.constant 1.000000e+00 : f32
    %164 = vector.broadcast %cst_52 : f32 to vector<2x32xf32>
    %165 = arith.addf %164, %163 : vector<2x32xf32>
    %166 = arith.divf %164, %165 : vector<2x32xf32>
    %167 = vector.extract_strided_slice %160 {offsets = [0, 32], sizes = [2, 32], strides = [1, 1]} : vector<2x128xf32> to vector<2x32xf32>
    %168 = arith.negf %167 : vector<2x32xf32>
    %169 = math.exp %168 : vector<2x32xf32>
    %cst_53 = arith.constant 1.000000e+00 : f32
    %170 = vector.broadcast %cst_53 : f32 to vector<2x32xf32>
    %171 = arith.addf %170, %169 : vector<2x32xf32>
    %172 = arith.divf %170, %171 : vector<2x32xf32>
    %173 = vector.extract_strided_slice %160 {offsets = [0, 64], sizes = [2, 32], strides = [1, 1]} : vector<2x128xf32> to vector<2x32xf32>
    %174 = math.tanh %173 : vector<2x32xf32>
    %175 = vector.extract_strided_slice %160 {offsets = [0, 96], sizes = [2, 32], strides = [1, 1]} : vector<2x128xf32> to vector<2x32xf32>
    %176 = arith.negf %175 : vector<2x32xf32>
    %177 = math.exp %176 : vector<2x32xf32>
    %cst_54 = arith.constant 1.000000e+00 : f32
    %178 = vector.broadcast %cst_54 : f32 to vector<2x32xf32>
    %179 = arith.addf %178, %177 : vector<2x32xf32>
    %180 = arith.divf %178, %179 : vector<2x32xf32>
    %181 = arith.mulf %172, %154 : vector<2x32xf32>
    %182 = arith.mulf %166, %174 : vector<2x32xf32>
    %183 = arith.addf %181, %182 : vector<2x32xf32>
    %184 = math.tanh %183 : vector<2x32xf32>
    %185 = arith.mulf %180, %184 : vector<2x32xf32>
    %c10_55 = arith.constant 10 : index
    %c0_56 = arith.constant 0 : index
    %186 = vector.load %arg15[%c10_55, %c0_56] : memref<16x32xf32, #tpu.memory_space<vmem>>, vector<2x32xf32>
    tpu.vector_store %arg15[%c10_55, %c0_56], %185 {strides = array<i32>} : memref<16x32xf32, #tpu.memory_space<vmem>>, vector<2x32xf32>,
    %c12 = arith.constant 12 : index
    %c0_57 = arith.constant 0 : index
    %187 = vector.load %arg12[%c12, %c0_57] : memref<16x128xf32, #tpu.memory_space<vmem>>, vector<2x128xf32>
    %cst_58 = arith.constant dense<0.000000e+00> : vector<2x128xf32>
    %188 = tpu.matmul %185, %10, %cst_58 {dimension_numbers = #tpu.dot_dimension_numbers<[1], [0], [0], [1], [0, 0, 1, 1], [], []>} : vector<2x32xf32>, vector<32x128xf32>, vector<2x128xf32> -> vector<2x128xf32>
    %189 = arith.addf %187, %188 : vector<2x128xf32>
    %190 = vector.extract_strided_slice %189 {offsets = [0, 0], sizes = [2, 32], strides = [1, 1]} : vector<2x128xf32> to vector<2x32xf32>
    %191 = arith.negf %190 : vector<2x32xf32>
    %192 = math.exp %191 : vector<2x32xf32>
    %cst_59 = arith.constant 1.000000e+00 : f32
    %193 = vector.broadcast %cst_59 : f32 to vector<2x32xf32>
    %194 = arith.addf %193, %192 : vector<2x32xf32>
    %195 = arith.divf %193, %194 : vector<2x32xf32>
    %196 = vector.extract_strided_slice %189 {offsets = [0, 32], sizes = [2, 32], strides = [1, 1]} : vector<2x128xf32> to vector<2x32xf32>
    %197 = arith.negf %196 : vector<2x32xf32>
    %198 = math.exp %197 : vector<2x32xf32>
    %cst_60 = arith.constant 1.000000e+00 : f32
    %199 = vector.broadcast %cst_60 : f32 to vector<2x32xf32>
    %200 = arith.addf %199, %198 : vector<2x32xf32>
    %201 = arith.divf %199, %200 : vector<2x32xf32>
    %202 = vector.extract_strided_slice %189 {offsets = [0, 64], sizes = [2, 32], strides = [1, 1]} : vector<2x128xf32> to vector<2x32xf32>
    %203 = math.tanh %202 : vector<2x32xf32>
    %204 = vector.extract_strided_slice %189 {offsets = [0, 96], sizes = [2, 32], strides = [1, 1]} : vector<2x128xf32> to vector<2x32xf32>
    %205 = arith.negf %204 : vector<2x32xf32>
    %206 = math.exp %205 : vector<2x32xf32>
    %cst_61 = arith.constant 1.000000e+00 : f32
    %207 = vector.broadcast %cst_61 : f32 to vector<2x32xf32>
    %208 = arith.addf %207, %206 : vector<2x32xf32>
    %209 = arith.divf %207, %208 : vector<2x32xf32>
    %210 = arith.mulf %201, %183 : vector<2x32xf32>
    %211 = arith.mulf %195, %203 : vector<2x32xf32>
    %212 = arith.addf %210, %211 : vector<2x32xf32>
    %213 = math.tanh %212 : vector<2x32xf32>
    %214 = arith.mulf %209, %213 : vector<2x32xf32>
    %c12_62 = arith.constant 12 : index
    %c0_63 = arith.constant 0 : index
    %215 = vector.load %arg15[%c12_62, %c0_63] : memref<16x32xf32, #tpu.memory_space<vmem>>, vector<2x32xf32>
    tpu.vector_store %arg15[%c12_62, %c0_63], %214 {strides = array<i32>} : memref<16x32xf32, #tpu.memory_space<vmem>>, vector<2x32xf32>,
    %c14 = arith.constant 14 : index
    %c0_64 = arith.constant 0 : index
    %216 = vector.load %arg12[%c14, %c0_64] : memref<16x128xf32, #tpu.memory_space<vmem>>, vector<2x128xf32>
    %cst_65 = arith.constant dense<0.000000e+00> : vector<2x128xf32>
    %217 = tpu.matmul %214, %10, %cst_65 {dimension_numbers = #tpu.dot_dimension_numbers<[1], [0], [0], [1], [0, 0, 1, 1], [], []>} : vector<2x32xf32>, vector<32x128xf32>, vector<2x128xf32> -> vector<2x128xf32>
    %218 = arith.addf %216, %217 : vector<2x128xf32>
    %219 = vector.extract_strided_slice %218 {offsets = [0, 0], sizes = [2, 32], strides = [1, 1]} : vector<2x128xf32> to vector<2x32xf32>
    %220 = arith.negf %219 : vector<2x32xf32>
    %221 = math.exp %220 : vector<2x32xf32>
    %cst_66 = arith.constant 1.000000e+00 : f32
    %222 = vector.broadcast %cst_66 : f32 to vector<2x32xf32>
    %223 = arith.addf %222, %221 : vector<2x32xf32>
    %224 = arith.divf %222, %223 : vector<2x32xf32>
    %225 = vector.extract_strided_slice %218 {offsets = [0, 32], sizes = [2, 32], strides = [1, 1]} : vector<2x128xf32> to vector<2x32xf32>
    %226 = arith.negf %225 : vector<2x32xf32>
    %227 = math.exp %226 : vector<2x32xf32>
    %cst_67 = arith.constant 1.000000e+00 : f32
    %228 = vector.broadcast %cst_67 : f32 to vector<2x32xf32>
    %229 = arith.addf %228, %227 : vector<2x32xf32>
    %230 = arith.divf %228, %229 : vector<2x32xf32>
    %231 = vector.extract_strided_slice %218 {offsets = [0, 64], sizes = [2, 32], strides = [1, 1]} : vector<2x128xf32> to vector<2x32xf32>
    %232 = math.tanh %231 : vector<2x32xf32>
    %233 = vector.extract_strided_slice %218 {offsets = [0, 96], sizes = [2, 32], strides = [1, 1]} : vector<2x128xf32> to vector<2x32xf32>
    %234 = arith.negf %233 : vector<2x32xf32>
    %235 = math.exp %234 : vector<2x32xf32>
    %cst_68 = arith.constant 1.000000e+00 : f32
    %236 = vector.broadcast %cst_68 : f32 to vector<2x32xf32>
    %237 = arith.addf %236, %235 : vector<2x32xf32>
    %238 = arith.divf %236, %237 : vector<2x32xf32>
    %239 = arith.mulf %230, %212 : vector<2x32xf32>
    %240 = arith.mulf %224, %232 : vector<2x32xf32>
    %241 = arith.addf %239, %240 : vector<2x32xf32>
    %242 = math.tanh %241 : vector<2x32xf32>
    %243 = arith.mulf %238, %242 : vector<2x32xf32>
    %c14_69 = arith.constant 14 : index
    %c0_70 = arith.constant 0 : index
    %244 = vector.load %arg15[%c14_69, %c0_70] : memref<16x32xf32, #tpu.memory_space<vmem>>, vector<2x32xf32>
    tpu.vector_store %arg15[%c14_69, %c0_70], %243 {strides = array<i32>} : memref<16x32xf32, #tpu.memory_space<vmem>>, vector<2x32xf32>,
    %c0_71 = arith.constant 0 : index
    %c0_72 = arith.constant 0 : index
    %245 = vector.load %arg13[%c0_71, %c0_72] : memref<2x32xf32, #tpu.memory_space<vmem>>, vector<2x32xf32>
    tpu.vector_store %arg13[%c0_71, %c0_72], %243 {strides = array<i32>} : memref<2x32xf32, #tpu.memory_space<vmem>>, vector<2x32xf32>,
    %c0_73 = arith.constant 0 : index
    %c0_74 = arith.constant 0 : index
    %246 = vector.load %arg14[%c0_73, %c0_74] : memref<2x32xf32, #tpu.memory_space<vmem>>, vector<2x32xf32>
    tpu.vector_store %arg14[%c0_73, %c0_74], %241 {strides = array<i32>} : memref<2x32xf32, #tpu.memory_space<vmem>>, vector<2x32xf32>,
    %c0_75 = arith.constant 0 : index
    %c0_76 = arith.constant 0 : index
    %247 = vector.load %arg15[%c0_75, %c0_76] : memref<16x32xf32, #tpu.memory_space<vmem>>, vector<16x32xf32>
    %cst_77 = arith.constant 0.000000e+00 : f32
    %248 = vector.broadcast %cst_77 : f32 to vector<16x32xf32>
    %249 = arith.maximumf %247, %248 : vector<16x32xf32>
    %c0_78 = arith.constant 0 : index
    %c0_79 = arith.constant 0 : index
    %250 = vector.load %arg7[%c0_78, %c0_79] : memref<32x4xf32, #tpu.memory_space<vmem>>, vector<32x4xf32>
    %cst_80 = arith.constant dense<0.000000e+00> : vector<16x4xf32>
    %251 = tpu.matmul %249, %250, %cst_80 {dimension_numbers = #tpu.dot_dimension_numbers<[1], [0], [0], [1], [0, 0, 1, 1], [], []>} : vector<16x32xf32>, vector<32x4xf32>, vector<16x4xf32> -> vector<16x4xf32>
    %c0_81 = arith.constant 0 : index
    %c0_82 = arith.constant 0 : index
    %252 = vector.load %arg8[%c0_81, %c0_82] : memref<1x4xf32, #tpu.memory_space<vmem>>, vector<1x4xf32>
    %253 = vector.broadcast %252 : vector<1x4xf32> to vector<16x4xf32>
    %254 = arith.addf %251, %253 : vector<16x4xf32>
    %c0_83 = arith.constant 0 : index
    %c0_84 = arith.constant 0 : index
    %255 = vector.load %arg9[%c0_83, %c0_84] : memref<16x4xf32, #tpu.memory_space<vmem>>, vector<16x4xf32>
    tpu.vector_store %arg9[%c0_83, %c0_84], %254 {strides = array<i32>} : memref<16x4xf32, #tpu.memory_space<vmem>>, vector<16x4xf32>,
    %c0_i32_85 = arith.constant 0 : i32
    %256 = arith.cmpi eq, %arg0, %c0_i32_85 : i32
    %257 = arith.extui %256 : i1 to i32
    %c0_i32_86 = arith.constant 0 : i32
    %258 = arith.cmpi ne, %257, %c0_i32_86 : i32
    scf.if %258 {
      %c0_87 = arith.constant 0 : index
      %c0_88 = arith.constant 0 : index
      %259 = vector.load %arg10[%c0_87, %c0_88] : memref<2x32xf32, #tpu.memory_space<vmem>>, vector<2x32xf32>
      tpu.vector_store %arg10[%c0_87, %c0_88], %243 {strides = array<i32>} : memref<2x32xf32, #tpu.memory_space<vmem>>, vector<2x32xf32>,
      %c0_89 = arith.constant 0 : index
      %c0_90 = arith.constant 0 : index
      %260 = vector.load %arg11[%c0_89, %c0_90] : memref<2x32xf32, #tpu.memory_space<vmem>>, vector<2x32xf32>
      tpu.vector_store %arg11[%c0_89, %c0_90], %241 {strides = array<i32>} : memref<2x32xf32, #tpu.memory_space<vmem>>, vector<2x32xf32>,
    } else {
    }
    return
  }
  func.func @transform_0(%arg0: i32) -> (i32, i32) {
    %c0_i32 = arith.constant 0 : i32
    %c0_i32_0 = arith.constant 0 : i32
    return %arg0, %c0_i32 : i32, i32
  }
  func.func @transform_1(%arg0: i32) -> (i32, i32) {
    %c0_i32 = arith.constant 0 : i32
    %c0_i32_0 = arith.constant 0 : i32
    %c0_i32_1 = arith.constant 0 : i32
    return %c0_i32, %c0_i32_0 : i32, i32
  }
  func.func @transform_2(%arg0: i32) -> (i32, i32) {
    %c0_i32 = arith.constant 0 : i32
    %c0_i32_0 = arith.constant 0 : i32
    %c0_i32_1 = arith.constant 0 : i32
    return %c0_i32, %c0_i32_0 : i32, i32
  }
  func.func @transform_3(%arg0: i32) -> (i32, i32) {
    %c0_i32 = arith.constant 0 : i32
    %c0_i32_0 = arith.constant 0 : i32
    %c0_i32_1 = arith.constant 0 : i32
    return %c0_i32, %c0_i32_0 : i32, i32
  }
  func.func @transform_4(%arg0: i32) -> (i32, i32) {
    %c0_i32 = arith.constant 0 : i32
    %c0_i32_0 = arith.constant 0 : i32
    %c0_i32_1 = arith.constant 0 : i32
    return %c0_i32, %c0_i32_0 : i32, i32
  }
  func.func @transform_5(%arg0: i32) -> (i32, i32) {
    %c0_i32 = arith.constant 0 : i32
    %c0_i32_0 = arith.constant 0 : i32
    %c0_i32_1 = arith.constant 0 : i32
    return %c0_i32, %c0_i32_0 : i32, i32
  }
  func.func @transform_6(%arg0: i32) -> (i32, i32) {
    %c0_i32 = arith.constant 0 : i32
    %c0_i32_0 = arith.constant 0 : i32
    %c0_i32_1 = arith.constant 0 : i32
    return %c0_i32, %c0_i32_0 : i32, i32
  }
  func.func @transform_7(%arg0: i32) -> (i32, i32) {
    %c0_i32 = arith.constant 0 : i32
    %c0_i32_0 = arith.constant 0 : i32
    %c0_i32_1 = arith.constant 0 : i32
    return %c0_i32, %c0_i32_0 : i32, i32
  }
  func.func @transform_8(%arg0: i32) -> (i32, i32) {
    %c0_i32 = arith.constant 0 : i32
    %c0_i32_0 = arith.constant 0 : i32
    return %arg0, %c0_i32 : i32, i32
  }
  func.func @transform_9(%arg0: i32) -> (i32, i32) {
    %c0_i32 = arith.constant 0 : i32
    %c0_i32_0 = arith.constant 0 : i32
    %c0_i32_1 = arith.constant 0 : i32
    return %c0_i32, %c0_i32_0 : i32, i32
  }
  func.func @transform_10(%arg0: i32) -> (i32, i32) {
    %c0_i32 = arith.constant 0 : i32
    %c0_i32_0 = arith.constant 0 : i32
    %c0_i32_1 = arith.constant 0 : i32
    return %c0_i32, %c0_i32_0 : i32, i32
  }
}

</mosaic_0001>

<bundles_post_ra>
// kernel: lstm_predictor_forward.3
= control target key start
LH: loop header
LB: loop body
LE: loop exit
PB: predicated region body
PF: predicated region fallthrough
CT: control target
= control target key end

     0   :  { %16 = vsyncpa [#allocation7], 0  ;;  %s825_s16 = smov [#allocation6]   ;;  %s826_s18 = smov 128   ;;  %s1052_s0 = inlined_call_operand.vmem [shape: f32[16,32], index: 0, kind: input, shape index: {}]   ;;  %s1053_s1 = inlined_call_operand.vmem [shape: f32[32,128], index: 1, kind: input, shape index: {}]   ;;  %s1054_s2 = inlined_call_operand.vmem [shape: f32[1,128], index: 2, kind: input, shape index: {}]   ;;  %s1055_s3 = inlined_call_operand.hbm [shape: f32[32,128], index: 3, kind: input, shape index: {}]   ;;  %s1056_s4 = inlined_call_operand.vmem [shape: f32[2,32], index: 4, kind: input, shape index: {}]   ;;  %s1057_s5 = inlined_call_operand.vmem [shape: f32[2,32], index: 5, kind: input, shape index: {}]   ;;  %s1058_s6 = inlined_call_operand.vmem [shape: f32[32,4], index: 6, kind: input, shape index: {}]   ;;  %s1059_s7 = inlined_call_operand.vmem [shape: f32[1,4], index: 7, kind: input, shape index: {}]   ;;  %s1060_s8 = inlined_call_operand.vmem [shape: f32[16,4], index: 8, kind: output, shape index: {0}]   ;;  %s1061_s9 = inlined_call_operand.vmem [shape: f32[2,32], index: 9, kind: output, shape index: {1}]   ;;  %s1062_s10 = inlined_call_operand.vmem [shape: f32[2,32], index: 10, kind: output, shape index: {2}]  }
   0x1   :  { %s27_s15 = sshll.u32 %s1055_s3, 4  ;;  %s29_s17 = sshll.u32 %s825_s16, 4  ;;  %s28_s15 = int_to_ptr.hbm [resolvable:$true] %s27_s15  ;;  %s30_s17 = int_to_ptr.vmem [resolvable:$true] %s29_s17 }
   0x2   :  { %s827_s19 = smov 8  }
   0x3   :  { %35 = dma.hbm_to_vmem [thread:$0]  %s28_s15, 512, %s30_s17, [#allocation7], %s826_s18, %s826_s18, %s827_s19  }
   0x4   :  { %823 = dma.done.wait [#allocation7], 512  }
   0x5   :  { %824 = vsyncadd [#allocation7], 4294966784  ;;  %v62_v0 = vld [vmem:[%s1053_s1 + $0x18] sm:$0xff]  ;;  %v61_v1 = vld [vmem:[%s1053_s1 + $0x10] sm:$0xff]  ;;  %vm53_vm0 = vcmask 254976   ;;  %vm67_vm1 = vcmask 261120  }
   0x6   :  { %86 = vmatpush.msra.mxu0 %v62_v0  ;;  %v895_v2 = vld [vmem:[#allocation6 + $0x18] sm:$0xff]  ;;  %v60_v3 = vld [vmem:[%s1053_s1 + $0x8] sm:$0xff]  ;;  %v901_v4 = vld [vmem:[#allocation6 + $0x10] sm:$0xff]  ;;  %s828_s13 = smov 64  }
   0x7   :  { %121 = vmatpush.msra.mxu1 %v895_v2  ;;  %192 = vmatpush.msra.mxu3 %v895_v2  ;;  %v904_v5 = vld [vmem:[#allocation6 + $0x8] sm:$0xff]  ;;  %v52_v6 = vld [vmem:[%s1056_s4] sm:$0x3]  ;;  %v919_v9 = vld [vmem:[#allocation6] sm:$0xff] }
   0x8   :  { %87 = vmatpush.msra.mxu0 %v61_v1  ;;  %390 = vmatpush.msra.mxu2 %v895_v2  ;;  %v59_v7 = vld [vmem:[%s1053_s1] sm:$0xff]  ;;  %54 = vst.msk [vmem:[#allocation3] sm:$0x3] %vm53_vm0, %v52_v6 }
   0x9   :  { %122 = vmatpush.msra.mxu1 %v901_v4  ;;  %193 = vmatpush.msra.mxu3 %v901_v4  ;;  %v57_v8 = vld [vmem:[%s1052_s0] sm:$0xff] }
   0xa   :  { %88 = vmatpush.msra.mxu0 %v60_v3  ;;  %391 = vmatpush.msra.mxu2 %v901_v4  ;;  %v55_v11 = vld [vmem:[%s1057_s5] sm:$0x3]  ;;  %s829_s5 = smov 32  }
   0xb   :  { %123 = vmatpush.msra.mxu1 %v904_v5  ;;  %194 = vmatpush.msra.mxu3 %v904_v5  ;;  %56 = vst.msk [vmem:[#allocation4] sm:$0x3] %vm53_vm0, %v55_v11  ;;  %v953_v12 = vld [vmem:[%s1054_s2] ss:$0 sm:$0xff] }
   0xc   :  { %89 = vmatpush.msra.mxu0 %v59_v7  ;;  %392 = vmatpush.msra.mxu2 %v904_v5 }
   0xd   :  { %707 = vmatmul.msk.f32.vlgmr.msra.gmra.mxu0 %vm67_vm1, %v57_v8  ;;  %124 = vmatpush.msra.mxu1 %v919_v9 }
   0xe   :  { %195 = vmatpush.msra.mxu3 %v919_v9  ;;  %393 = vmatpush.msra.mxu2 %v919_v9 }
   0xf   :  { %324 = vmatpush.msrb.mxu1 %v895_v2  ;;  %v103_v10 = vld [vmem:[#allocation3] sm:$0x3]  ;;  %522 = vmatpush.msrb.mxu0 %v895_v2 }
  0x10   :  { %258 = vmatpush.msrb.mxu3 %v895_v2  ;;  %709 = vmatmul.msk.f32.vlgmr.msra.gmra.mxu1 %vm67_vm1, %v103_v10 }
  0x11   :  { %325 = vmatpush.msrb.mxu1 %v901_v4  ;;  %523 = vmatpush.msrb.mxu0 %v901_v4 }
  0x12   :  { %259 = vmatpush.msrb.mxu3 %v901_v4  ;;  %v104_v19 = vld [vmem:[#allocation4] sm:$0x3] }
  0x13   :  { %326 = vmatpush.msrb.mxu1 %v904_v5  ;;  %524 = vmatpush.msrb.mxu0 %v904_v5 }
  0x14   :  { %260 = vmatpush.msrb.mxu3 %v904_v5 }
  0x15   :  { %327 = vmatpush.msrb.mxu1 %v919_v9  ;;  %525 = vmatpush.msrb.mxu0 %v919_v9 }
  0x16   :  { %261 = vmatpush.msrb.mxu3 %v919_v9 }
  0x17   :  { %588 = vmatpush.msra.mxu1 %v895_v2 }
  0x19   :  { %589 = vmatpush.msra.mxu1 %v901_v4 }
  0x1b   :  { %590 = vmatpush.msra.mxu1 %v904_v5 }
  0x1d   :  { %591 = vmatpush.msra.mxu1 %v919_v9 }
  0x8a   :  { %v91_v13 = vpop.f32.mrf.mxu0 }
  0x8b   :  { %v92_v14 = vadd.f32 %v953_v12, %v91_v13 }
  0x8d   :  { %97 = vst [vmem:[#allocation2] sm:$0xff] %v92_v14  ;;  %v126_v15 = vpop.f32.mrf.mxu1 }
  0x94   :  { %v105_v16 = vld [vmem:[#allocation2] sm:$0x3]  ;;  %v177_v43 = vld [vmem:[#allocation2 + $0x2] sm:$0x3] }
  0x95   :  { %v129_v17 = vadd.f32 %v126_v15, %v105_v16 }
  0x97   :  { %735 = vtanh.f32 %v129_v17  ;;  %v710_v20 = vmul.f32 -1.442695, %v129_v17 }
  0x99   :  { %737 = vpow2.f32 %v710_v20 }
  0x9d   :  { %v736_v18 = vpop.eup %735 }
  0x9e   :  { %156 = vrot.lane.b32.xlu0 %v736_v18, %s828_s13 }
  0x9f   :  { %v738_v21 = vpop.eup %737 }
  0xa0   :  { %v133_v22 = vadd.f32 1.0, %v738_v21 }
  0xa2   :  { %739 = vrcp.f32 %v133_v22  ;;  %v145_v28 = vand.u32 2147483648, %v133_v22  ;;  %vm139_vm3 = vweird.f32 %v133_v22  ;;  %v143_v29 = vand.u32 2147483647, %v133_v22 }
  0xa4   :  { %v146_v31 = vor.u32 1.1754944e-38, %v145_v28  ;;  %vm144_vm5 = vcmp.eq.f32.partialorder %v143_v29, 8.507059e+37 }
  0xa6   :  { %151 = vrot.lane.b32.xlu0 %v104_v19, %s829_s5 }
  0xa8   :  { %v740_v23 = vpop.eup %739 }
  0xa9   :  { %v135_v24 = vmul.f32 %v740_v23, %v133_v22  ;;  %vm140_vm2 = vweird.f32 %v740_v23 }
  0xaa   :  { %vm141_vm4 = vmor %vm139_vm3, %vm140_vm2 }
  0xab   :  { %v136_v25 = vsub.f32 1.0, %v135_v24 }
  0xad   :  { %v137_v26 = vmul.f32 %v740_v23, %v136_v25 }
  0xaf   :  { %v138_v27 = vadd.f32 %v740_v23, %v137_v26 }
  0xb1   :  { %v142_v30 = vsel %vm141_vm4, %v740_v23, %v138_v27  ;;  %vm686_vm4 = vcmask 31744  }
  0xb2   :  { %v147_v33 = vsel %vm144_vm5, %v146_v31, %v142_v30 }
 0x110   :  { %v157_v32 = vpop.permute.xlu0 %156 }
 0x111   :  { %v159_v34 = vmul.f32 %v157_v32, %v147_v33  ;;  %v309_v32 = vld [vmem:[#allocation2 + $0x6] sm:$0x3] }
 0x113   :  { %161 = vrot.lane.b32.xlu1 %v159_v34, %s829_s5 }
 0x118   :  { %v152_v35 = vpop.permute.xlu0 %151 }
 0x119   :  { %v154_v36 = vmul.f32 %v152_v35, %v147_v33 }
 0x185   :  { %v162_v37 = vpop.permute.xlu1 %161 }
 0x186   :  { %v164_v38 = vadd.f32 %v162_v37, %v154_v36 }
 0x188   :  { %741 = vtanh.f32 %v164_v38 }
 0x18e   :  { %v742_v39 = vpop.eup %741 }
 0x18f   :  { %167 = vrot.lane.b32.xlu1 %v742_v39, %s828_s13 }
 0x201   :  { %v168_v40 = vpop.permute.xlu1 %167 }
 0x202   :  { %v170_v41 = vmul.f32 %v168_v40, %v147_v33 }
 0x204   :  { %172 = vrot.lane.b32.xlu2 %v170_v41, %s829_s5 }
 0x25e   :  { %v173_v42 = vpop.permute.xlu2 %172 }
 0x25f   :  { %176 = vst.msk [vmem:[#allocation5] sm:$0x3] %vm53_vm0, %v173_v42  ;;  %711 = vmatmul.msk.f32.vlgmr.msra.gmra.mxu3 %vm67_vm1, %v173_v42 }
 0x260   :  { %456 = vmatpush.msra.mxu3 %v895_v2 }
 0x262   :  { %457 = vmatpush.msra.mxu3 %v901_v4 }
 0x264   :  { %458 = vmatpush.msra.mxu3 %v904_v5  ;;  %v243_v5 = vld [vmem:[#allocation2 + $0x4] sm:$0x3] }
 0x266   :  { %459 = vmatpush.msra.mxu3 %v919_v9 }
 0x2e2   :  { %v197_v44 = vpop.f32.mrf.mxu3 }
 0x2e3   :  { %v200_v45 = vadd.f32 %v197_v44, %v177_v43 }
 0x2e5   :  { %743 = vtanh.f32 %v200_v45  ;;  %v712_v47 = vmul.f32 -1.442695, %v200_v45 }
 0x2e7   :  { %745 = vpow2.f32 %v712_v47 }
 0x2eb   :  { %v744_v46 = vpop.eup %743 }
 0x2ec   :  { %223 = vrot.lane.b32.xlu2 %v744_v46, %s828_s13 }
 0x2ed   :  { %v746_v48 = vpop.eup %745 }
 0x2ee   :  { %v204_v49 = vadd.f32 1.0, %v746_v48 }
 0x2f0   :  { %747 = vrcp.f32 %v204_v49  ;;  %v216_v55 = vand.u32 2147483648, %v204_v49  ;;  %vm210_vm7 = vweird.f32 %v204_v49  ;;  %v214_v56 = vand.u32 2147483647, %v204_v49 }
 0x2f2   :  { %v217_v58 = vor.u32 1.1754944e-38, %v216_v55  ;;  %vm215_vm9 = vcmp.eq.f32.partialorder %v214_v56, 8.507059e+37  ;;  %v58_v55 = vld [vmem:[%s1052_s0 + $0x8] sm:$0xff] }
 0x2f3   :  { %708 = vmatmul.msk.f32.gmra.mxu0 %vm67_vm1, %v58_v55 }
 0x2f6   :  { %v748_v50 = vpop.eup %747 }
 0x2f7   :  { %v206_v51 = vmul.f32 %v748_v50, %v204_v49  ;;  %vm211_vm6 = vweird.f32 %v748_v50 }
 0x2f8   :  { %vm212_vm8 = vmor %vm210_vm7, %vm211_vm6 }
 0x2f9   :  { %v207_v52 = vsub.f32 1.0, %v206_v51 }
 0x2fb   :  { %v208_v53 = vmul.f32 %v748_v50, %v207_v52 }
 0x2fd   :  { %v209_v54 = vadd.f32 %v748_v50, %v208_v53 }
 0x2ff   :  { %v213_v57 = vsel %vm212_vm8, %v748_v50, %v209_v54 }
 0x300   :  { %v218_v60 = vsel %vm215_vm9, %v217_v58, %v213_v57  ;;  %v652_v58 = vld [vmem:[%s1058_s6 + $0x18] sm:$0xff] }
 0x301   :  { %v221_v62 = vmul.f32 %v218_v60, %v164_v38  ;;  %675 = vmatpush.msrb.mxu2 %v652_v58 }
 0x346   :  { %v224_v59 = vpop.permute.xlu2 %223 }
 0x347   :  { %v226_v61 = vmul.f32 %v224_v59, %v218_v60  ;;  %v651_v59 = vld [vmem:[%s1058_s6 + $0x10] sm:$0xff] }
 0x348   :  { %676 = vmatpush.msrb.mxu2 %v651_v59 }
 0x349   :  { %228 = vrot.lane.b32.xlu0 %v226_v61, %s829_s5  ;;  %v649_v61 = vld [vmem:[%s1058_s6] sm:$0xff] }
 0x3bb   :  { %v229_v63 = vpop.permute.xlu0 %228 }
 0x3bc   :  { %v231_v0 = vadd.f32 %v229_v63, %v221_v62  ;;  %v94_v62 = vpop.f32.mrf.mxu0 }
 0x3bd   :  { %v95_v63 = vadd.f32 %v953_v12, %v94_v62 }
 0x3be   :  { %749 = vtanh.f32 %v231_v0 }
 0x3bf   :  { %98 = vst [vmem:[#allocation2 + $0x8] sm:$0xff] %v95_v63 }
 0x3c4   :  { %v750_v1 = vpop.eup %749 }
 0x3c5   :  { %234 = vrot.lane.b32.xlu1 %v750_v1, %s828_s13 }
 0x3c6   :  { %v507_v58 = vld [vmem:[#allocation2 + $0xc] sm:$0x3] }
 0x437   :  { %v235_v2 = vpop.permute.xlu1 %234 }
 0x438   :  { %v237_v3 = vmul.f32 %v235_v2, %v218_v60  ;;  %v650_v60 = vld [vmem:[%s1058_s6 + $0x8] sm:$0xff] }
 0x439   :  { %677 = vmatpush.msrb.mxu2 %v650_v60 }
 0x43a   :  { %239 = vrot.lane.b32.xlu2 %v237_v3, %s829_s5  ;;  %v375_v3 = vld [vmem:[#allocation2 + $0x8] sm:$0x3] }
 0x43b   :  { %678 = vmatpush.msrb.mxu2 %v649_v61 }
 0x494   :  { %v240_v4 = vpop.permute.xlu2 %239 }
 0x495   :  { %242 = vst.msk [vmem:[#allocation5 + $0x2] sm:$0x3] %vm53_vm0, %v240_v4  ;;  %713 = vmatmul.msk.f32.vlgmr.msrb.gmra.mxu3 %vm67_vm1, %v240_v4 }
 0x518   :  { %v263_v6 = vpop.f32.mrf.mxu3 }
 0x519   :  { %v266_v7 = vadd.f32 %v263_v6, %v243_v5  ;;  %v1006_v6 = vld [vmem:[%s1059_s7] ss:$0 sm:$0xff]  ;;  %s830_s7 = smov 96  }
 0x51b   :  { %751 = vtanh.f32 %v266_v7  ;;  %v714_v9 = vmul.f32 -1.442695, %v266_v7 }
 0x51d   :  { %753 = vpow2.f32 %v714_v9 }
 0x521   :  { %v752_v8 = vpop.eup %751 }
 0x522   :  { %289 = vrot.lane.b32.xlu0 %v752_v8, %s828_s13 }
 0x523   :  { %v754_v10 = vpop.eup %753 }
 0x524   :  { %v270_v11 = vadd.f32 1.0, %v754_v10 }
 0x526   :  { %755 = vrcp.f32 %v270_v11  ;;  %v282_v18 = vand.u32 2147483648, %v270_v11  ;;  %vm276_vm11 = vweird.f32 %v270_v11  ;;  %v280_v19 = vand.u32 2147483647, %v270_v11 }
 0x528   :  { %v283_v21 = vor.u32 1.1754944e-38, %v282_v18  ;;  %vm281_vm13 = vcmp.eq.f32.partialorder %v280_v19, 8.507059e+37 }
 0x52c   :  { %v756_v13 = vpop.eup %755 }
 0x52d   :  { %v272_v14 = vmul.f32 %v756_v13, %v270_v11  ;;  %vm277_vm10 = vweird.f32 %v756_v13 }
 0x52e   :  { %vm278_vm12 = vmor %vm276_vm11, %vm277_vm10 }
 0x52f   :  { %v273_v15 = vsub.f32 1.0, %v272_v14 }
 0x531   :  { %v274_v16 = vmul.f32 %v756_v13, %v273_v15 }
 0x533   :  { %v275_v17 = vadd.f32 %v756_v13, %v274_v16 }
 0x535   :  { %v279_v20 = vsel %vm278_vm12, %v756_v13, %v275_v17 }
 0x536   :  { %v284_v23 = vsel %vm281_vm13, %v283_v21, %v279_v20 }
 0x537   :  { %v287_v25 = vmul.f32 %v284_v23, %v231_v0 }
 0x594   :  { %v290_v22 = vpop.permute.xlu0 %289 }
 0x595   :  { %v292_v24 = vmul.f32 %v290_v22, %v284_v23 }
 0x597   :  { %294 = vrot.lane.b32.xlu1 %v292_v24, %s829_s5 }
 0x609   :  { %v295_v26 = vpop.permute.xlu1 %294 }
 0x60a   :  { %v297_v27 = vadd.f32 %v295_v26, %v287_v25 }
 0x60c   :  { %757 = vtanh.f32 %v297_v27 }
 0x612   :  { %v758_v28 = vpop.eup %757 }
 0x613   :  { %300 = vrot.lane.b32.xlu2 %v758_v28, %s828_s13 }
 0x66d   :  { %v301_v29 = vpop.permute.xlu2 %300 }
 0x66e   :  { %v303_v30 = vmul.f32 %v301_v29, %v284_v23 }
 0x670   :  { %305 = vrot.lane.b32.xlu0 %v303_v30, %s829_s5 }
 0x6e2   :  { %v306_v31 = vpop.permute.xlu0 %305 }
 0x6e3   :  { %308 = vst.msk [vmem:[#allocation5 + $0x4] sm:$0x3] %vm53_vm0, %v306_v31  ;;  %715 = vmatmul.msk.f32.vlgmr.msrb.gmra.mxu1 %vm67_vm1, %v306_v31 }
 0x760   :  { %v329_v33 = vpop.f32.mrf.mxu1 }
 0x761   :  { %v332_v34 = vadd.f32 %v329_v33, %v309_v32  ;;  %v441_v32 = vld [vmem:[#allocation2 + $0xa] sm:$0x3] }
 0x763   :  { %759 = vtanh.f32 %v332_v34  ;;  %v716_v36 = vmul.f32 -1.442695, %v332_v34 }
 0x765   :  { %761 = vpow2.f32 %v716_v36 }
 0x769   :  { %v760_v35 = vpop.eup %759 }
 0x76a   :  { %355 = vrot.lane.b32.xlu1 %v760_v35, %s828_s13 }
 0x76b   :  { %v762_v37 = vpop.eup %761 }
 0x76c   :  { %v336_v38 = vadd.f32 1.0, %v762_v37 }
 0x76e   :  { %763 = vrcp.f32 %v336_v38  ;;  %v348_v44 = vand.u32 2147483648, %v336_v38  ;;  %vm342_vm15 = vweird.f32 %v336_v38  ;;  %v346_v45 = vand.u32 2147483647, %v336_v38 }
 0x770   :  { %v349_v47 = vor.u32 1.1754944e-38, %v348_v44  ;;  %vm347_vm3 = vcmp.eq.f32.partialorder %v346_v45, 8.507059e+37 }
 0x774   :  { %v764_v39 = vpop.eup %763 }
 0x775   :  { %v338_v40 = vmul.f32 %v764_v39, %v336_v38  ;;  %vm343_vm14 = vweird.f32 %v764_v39 }
 0x776   :  { %vm344_vm2 = vmor %vm342_vm15, %vm343_vm14 }
 0x777   :  { %v339_v41 = vsub.f32 1.0, %v338_v40 }
 0x779   :  { %v340_v42 = vmul.f32 %v764_v39, %v339_v41 }
 0x77b   :  { %v341_v43 = vadd.f32 %v764_v39, %v340_v42 }
 0x77d   :  { %v345_v46 = vsel %vm344_vm2, %v764_v39, %v341_v43 }
 0x77e   :  { %v350_v49 = vsel %vm347_vm3, %v349_v47, %v345_v46 }
 0x77f   :  { %v353_v51 = vmul.f32 %v350_v49, %v297_v27 }
 0x7dc   :  { %v356_v48 = vpop.permute.xlu1 %355 }
 0x7dd   :  { %v358_v50 = vmul.f32 %v356_v48, %v350_v49 }
 0x7df   :  { %360 = vrot.lane.b32.xlu2 %v358_v50, %s829_s5 }
 0x839   :  { %v361_v52 = vpop.permute.xlu2 %360 }
 0x83a   :  { %v363_v53 = vadd.f32 %v361_v52, %v353_v51 }
 0x83c   :  { %765 = vtanh.f32 %v363_v53 }
 0x842   :  { %v766_v54 = vpop.eup %765 }
 0x843   :  { %366 = vrot.lane.b32.xlu0 %v766_v54, %s828_s13 }
 0x8b5   :  { %v367_v56 = vpop.permute.xlu0 %366 }
 0x8b6   :  { %v369_v57 = vmul.f32 %v367_v56, %v350_v49 }
 0x8b8   :  { %371 = vrot.lane.b32.xlu1 %v369_v57, %s829_s5 }
 0x92a   :  { %v372_v0 = vpop.permute.xlu1 %371 }
 0x92b   :  { %374 = vst.msk [vmem:[#allocation5 + $0x6] sm:$0x3] %vm53_vm0, %v372_v0  ;;  %717 = vmatmul.msk.f32.vlgmr.msra.gmra.mxu2 %vm67_vm1, %v372_v0 }
 0x932   :  { %v645_v1 = vld [vmem:[#allocation5] sm:$0xff] }
 0x933   :  { %v647_v2 = vmax.f32 %v645_v1, 0.0 }
 0x935   :  { %725 = vmatmul.msk.f32.vlgmr.msrb.gmra.mxu2 %vm67_vm1, %v647_v2 }
 0x9ae   :  { %v395_v4 = vpop.f32.mrf.mxu2 }
 0x9af   :  { %v398_v5 = vadd.f32 %v395_v4, %v375_v3 }
 0x9b1   :  { %767 = vtanh.f32 %v398_v5  ;;  %v718_v9 = vmul.f32 -1.442695, %v398_v5 }
 0x9b3   :  { %769 = vpow2.f32 %v718_v9 }
 0x9b7   :  { %v768_v12 = vpop.eup %767 }
 0x9b8   :  { %421 = vrot.lane.b32.xlu2 %v768_v12, %s828_s13  ;;  %v680_v7 = vpop.f32.mrf.mxu2 }
 0x9b9   :  { %v681_v8 = vadd.f32 %v1006_v6, %v680_v7  ;;  %v770_v10 = vpop.eup %769 }
 0x9ba   :  { %v402_v11 = vadd.f32 1.0, %v770_v10 }
 0x9bb   :  { %687 = vst.msk [vmem:[%s1060_s8] sm:$0xff] %vm686_vm4, %v681_v8 }
 0x9bc   :  { %771 = vrcp.f32 %v402_v11  ;;  %v414_v18 = vand.u32 2147483648, %v402_v11  ;;  %vm408_vm6 = vweird.f32 %v402_v11  ;;  %v412_v19 = vand.u32 2147483647, %v402_v11 }
 0x9be   :  { %v415_v21 = vor.u32 1.1754944e-38, %v414_v18  ;;  %vm413_vm8 = vcmp.eq.f32.partialorder %v412_v19, 8.507059e+37 }
 0x9c2   :  { %v772_v13 = vpop.eup %771 }
 0x9c3   :  { %v404_v14 = vmul.f32 %v772_v13, %v402_v11  ;;  %vm409_vm5 = vweird.f32 %v772_v13 }
 0x9c4   :  { %vm410_vm7 = vmor %vm408_vm6, %vm409_vm5 }
 0x9c5   :  { %v405_v15 = vsub.f32 1.0, %v404_v14 }
 0x9c7   :  { %v406_v16 = vmul.f32 %v772_v13, %v405_v15 }
 0x9c9   :  { %v407_v17 = vadd.f32 %v772_v13, %v406_v16 }
 0x9cb   :  { %v411_v20 = vsel %vm410_vm7, %v772_v13, %v407_v17 }
 0x9cc   :  { %v416_v23 = vsel %vm413_vm8, %v415_v21, %v411_v20  ;;  %v573_v21 = vld [vmem:[#allocation2 + $0xe] sm:$0x3] }
 0x9cd   :  { %v419_v25 = vmul.f32 %v416_v23, %v363_v53 }
 0xa12   :  { %v422_v22 = vpop.permute.xlu2 %421 }
 0xa13   :  { %v424_v24 = vmul.f32 %v422_v22, %v416_v23 }
 0xa15   :  { %426 = vrot.lane.b32.xlu0 %v424_v24, %s829_s5 }
 0xa87   :  { %v427_v26 = vpop.permute.xlu0 %426 }
 0xa88   :  { %v429_v27 = vadd.f32 %v427_v26, %v419_v25 }
 0xa8a   :  { %773 = vtanh.f32 %v429_v27 }
 0xa90   :  { %v774_v28 = vpop.eup %773 }
 0xa91   :  { %432 = vrot.lane.b32.xlu1 %v774_v28, %s828_s13 }
 0xb03   :  { %v433_v29 = vpop.permute.xlu1 %432 }
 0xb04   :  { %v435_v30 = vmul.f32 %v433_v29, %v416_v23 }
 0xb06   :  { %437 = vrot.lane.b32.xlu2 %v435_v30, %s829_s5 }
 0xb60   :  { %v438_v31 = vpop.permute.xlu2 %437 }
 0xb61   :  { %440 = vst.msk [vmem:[#allocation5 + $0x8] sm:$0x3] %vm53_vm0, %v438_v31  ;;  %719 = vmatmul.msk.f32.vlgmr.msra.gmra.mxu3 %vm67_vm1, %v438_v31 }
 0xbe4   :  { %v461_v33 = vpop.f32.mrf.mxu3 }
 0xbe5   :  { %v464_v34 = vadd.f32 %v461_v33, %v441_v32 }
 0xbe7   :  { %775 = vtanh.f32 %v464_v34  ;;  %v720_v36 = vmul.f32 -1.442695, %v464_v34 }
 0xbe9   :  { %777 = vpow2.f32 %v720_v36 }
 0xbed   :  { %v776_v35 = vpop.eup %775 }
 0xbee   :  { %487 = vrot.lane.b32.xlu0 %v776_v35, %s828_s13 }
 0xbef   :  { %v778_v37 = vpop.eup %777 }
 0xbf0   :  { %v468_v38 = vadd.f32 1.0, %v778_v37 }
 0xbf2   :  { %779 = vrcp.f32 %v468_v38  ;;  %v480_v44 = vand.u32 2147483648, %v468_v38  ;;  %vm474_vm10 = vweird.f32 %v468_v38  ;;  %v478_v45 = vand.u32 2147483647, %v468_v38 }
 0xbf4   :  { %v481_v47 = vor.u32 1.1754944e-38, %v480_v44  ;;  %vm479_vm12 = vcmp.eq.f32.partialorder %v478_v45, 8.507059e+37 }
 0xbf8   :  { %v780_v39 = vpop.eup %779 }
 0xbf9   :  { %v470_v40 = vmul.f32 %v780_v39, %v468_v38  ;;  %vm475_vm9 = vweird.f32 %v780_v39 }
 0xbfa   :  { %vm476_vm11 = vmor %vm474_vm10, %vm475_vm9 }
 0xbfb   :  { %v471_v41 = vsub.f32 1.0, %v470_v40 }
 0xbfd   :  { %v472_v42 = vmul.f32 %v780_v39, %v471_v41 }
 0xbff   :  { %v473_v43 = vadd.f32 %v780_v39, %v472_v42 }
 0xc01   :  { %v477_v46 = vsel %vm476_vm11, %v780_v39, %v473_v43 }
 0xc02   :  { %v482_v49 = vsel %vm479_vm12, %v481_v47, %v477_v46 }
 0xc03   :  { %v485_v51 = vmul.f32 %v482_v49, %v429_v27 }
 0xc60   :  { %v488_v48 = vpop.permute.xlu0 %487 }
 0xc61   :  { %v490_v50 = vmul.f32 %v488_v48, %v482_v49 }
 0xc63   :  { %492 = vrot.lane.b32.xlu1 %v490_v50, %s829_s5 }
 0xcd5   :  { %v493_v52 = vpop.permute.xlu1 %492 }
 0xcd6   :  { %v495_v53 = vadd.f32 %v493_v52, %v485_v51 }
 0xcd8   :  { %781 = vtanh.f32 %v495_v53 }
 0xcde   :  { %v782_v54 = vpop.eup %781 }
 0xcdf   :  { %498 = vrot.lane.b32.xlu2 %v782_v54, %s828_s13 }
 0xd39   :  { %v499_v55 = vpop.permute.xlu2 %498 }
 0xd3a   :  { %v501_v56 = vmul.f32 %v499_v55, %v482_v49 }
 0xd3c   :  { %503 = vrot.lane.b32.xlu0 %v501_v56, %s829_s5 }
 0xdae   :  { %v504_v57 = vpop.permute.xlu0 %503 }
 0xdaf   :  { %506 = vst.msk [vmem:[#allocation5 + $0xa] sm:$0x3] %vm53_vm0, %v504_v57  ;;  %721 = vmatmul.msk.f32.vlgmr.msrb.gmra.mxu0 %vm67_vm1, %v504_v57 }
 0xe2c   :  { %v527_v59 = vpop.f32.mrf.mxu0 }
 0xe2d   :  { %v530_v60 = vadd.f32 %v527_v59, %v507_v58 }
 0xe2f   :  { %783 = vtanh.f32 %v530_v60  ;;  %v722_v62 = vmul.f32 -1.442695, %v530_v60 }
 0xe31   :  { %785 = vpow2.f32 %v722_v62 }
 0xe35   :  { %v784_v61 = vpop.eup %783 }
 0xe36   :  { %553 = vrot.lane.b32.xlu1 %v784_v61, %s828_s13 }
 0xe37   :  { %v786_v63 = vpop.eup %785 }
 0xe38   :  { %v534_v0 = vadd.f32 1.0, %v786_v63 }
 0xe3a   :  { %787 = vrcp.f32 %v534_v0  ;;  %v546_v12 = vand.u32 2147483648, %v534_v0  ;;  %vm540_vm14 = vweird.f32 %v534_v0  ;;  %v544_v7 = vand.u32 2147483647, %v534_v0 }
 0xe3c   :  { %v547_v9 = vor.u32 1.1754944e-38, %v546_v12  ;;  %vm545_vm2 = vcmp.eq.f32.partialorder %v544_v7, 8.507059e+37 }
 0xe40   :  { %v788_v1 = vpop.eup %787 }
 0xe41   :  { %v536_v2 = vmul.f32 %v788_v1, %v534_v0  ;;  %vm541_vm13 = vweird.f32 %v788_v1 }
 0xe42   :  { %vm542_vm15 = vmor %vm540_vm14, %vm541_vm13 }
 0xe43   :  { %v537_v3 = vsub.f32 1.0, %v536_v2 }
 0xe45   :  { %v538_v4 = vmul.f32 %v788_v1, %v537_v3 }
 0xe47   :  { %v539_v5 = vadd.f32 %v788_v1, %v538_v4 }
 0xe49   :  { %v543_v8 = vsel %vm542_vm15, %v788_v1, %v539_v5 }
 0xe4a   :  { %v548_v11 = vsel %vm545_vm2, %v547_v9, %v543_v8 }
 0xe4b   :  { %v551_v14 = vmul.f32 %v548_v11, %v495_v53 }
 0xea8   :  { %v554_v10 = vpop.permute.xlu1 %553 }
 0xea9   :  { %v556_v13 = vmul.f32 %v554_v10, %v548_v11 }
 0xeab   :  { %558 = vrot.lane.b32.xlu2 %v556_v13, %s829_s5 }
 0xf05   :  { %v559_v15 = vpop.permute.xlu2 %558 }
 0xf06   :  { %v561_v16 = vadd.f32 %v559_v15, %v551_v14 }
 0xf08   :  { %789 = vtanh.f32 %v561_v16 }
 0xf0e   :  { %v790_v17 = vpop.eup %789 }
 0xf0f   :  { %564 = vrot.lane.b32.xlu0 %v790_v17, %s828_s13 }
 0xf81   :  { %v565_v18 = vpop.permute.xlu0 %564 }
 0xf82   :  { %v567_v19 = vmul.f32 %v565_v18, %v548_v11 }
 0xf84   :  { %569 = vrot.lane.b32.xlu1 %v567_v19, %s829_s5 }
 0xff6   :  { %v570_v20 = vpop.permute.xlu1 %569 }
 0xff7   :  { %572 = vst.msk [vmem:[#allocation5 + $0xc] sm:$0x3] %vm53_vm0, %v570_v20  ;;  %723 = vmatmul.msk.f32.vlgmr.msra.gmra.mxu1 %vm67_vm1, %v570_v20 }
0x1074   :  { %v593_v22 = vpop.f32.mrf.mxu1 }
0x1075   :  { %v596_v23 = vadd.f32 %v593_v22, %v573_v21 }
0x1077   :  { %791 = vtanh.f32 %v596_v23  ;;  %v724_v25 = vmul.f32 -1.442695, %v596_v23 }
0x1079   :  { %793 = vpow2.f32 %v724_v25 }
0x107d   :  { %v792_v24 = vpop.eup %791 }
0x107e   :  { %619 = vrot.lane.b32.xlu2 %v792_v24, %s828_s13 }
0x107f   :  { %v794_v26 = vpop.eup %793 }
0x1080   :  { %v600_v27 = vadd.f32 1.0, %v794_v26 }
0x1082   :  { %795 = vrcp.f32 %v600_v27  ;;  %v612_v33 = vand.u32 2147483648, %v600_v27  ;;  %vm606_vm5 = vweird.f32 %v600_v27  ;;  %v610_v34 = vand.u32 2147483647, %v600_v27 }
0x1084   :  { %v613_v36 = vor.u32 1.1754944e-38, %v612_v33  ;;  %vm611_vm7 = vcmp.eq.f32.partialorder %v610_v34, 8.507059e+37 }
0x1088   :  { %v796_v28 = vpop.eup %795 }
0x1089   :  { %v602_v29 = vmul.f32 %v796_v28, %v600_v27  ;;  %vm607_vm3 = vweird.f32 %v796_v28 }
0x108a   :  { %vm608_vm6 = vmor %vm606_vm5, %vm607_vm3 }
0x108b   :  { %v603_v30 = vsub.f32 1.0, %v602_v29 }
0x108d   :  { %v604_v31 = vmul.f32 %v796_v28, %v603_v30 }
0x108f   :  { %v605_v32 = vadd.f32 %v796_v28, %v604_v31 }
0x1091   :  { %v609_v35 = vsel %vm608_vm6, %v796_v28, %v605_v32 }
0x1092   :  { %v614_v38 = vsel %vm611_vm7, %v613_v36, %v609_v35 }
0x1093   :  { %v617_v40 = vmul.f32 %v614_v38, %v561_v16 }
0x10d8   :  { %v620_v37 = vpop.permute.xlu2 %619 }
0x10d9   :  { %v622_v39 = vmul.f32 %v620_v37, %v614_v38 }
0x10db   :  { %624 = vrot.lane.b32.xlu0 %v622_v39, %s829_s5 }
0x114d   :  { %v625_v41 = vpop.permute.xlu0 %624 }
0x114e   :  { %v627_v42 = vadd.f32 %v625_v41, %v617_v40 }
0x1150   :  { %797 = vtanh.f32 %v627_v42  ;;  %641 = vrot.lane.b32.xlu0 %v627_v42, %s830_s7 }
0x1156   :  { %v798_v43 = vpop.eup %797 }
0x1157   :  { %630 = vrot.lane.b32.xlu1 %v798_v43, %s828_s13 }
0x11c2   :  { %v642_v44 = vpop.permute.xlu0 %641 }
0x11c3   :  { %644 = vst.msk [vmem:[#allocation4] sm:$0x3] %vm53_vm0, %v642_v44 }
0x11c4   :  { %693 = vst.msk [vmem:[%s1062_s10] sm:$0x3] %vm53_vm0, %v642_v44 }
0x11c9   :  { %v631_v45 = vpop.permute.xlu1 %630 }
0x11ca   :  { %v633_v46 = vmul.f32 %v631_v45, %v614_v38 }
0x11cc   :  { %635 = vrot.lane.b32.xlu2 %v633_v46, %s829_s5 }
0x1226   :  { %v636_v47 = vpop.permute.xlu2 %635 }
0x1227   :  { %638 = vst.msk [vmem:[#allocation5 + $0xe] sm:$0x3] %vm53_vm0, %v636_v47 }
0x1228   :  { %639 = vst.msk [vmem:[#allocation3] sm:$0x3] %vm53_vm0, %v636_v47 }
0x1229   :  { %692 = vst.msk [vmem:[%s1061_s9] sm:$0x3] %vm53_vm0, %v636_v47 }
0x122e   :  { %v646_v48 = vld [vmem:[#allocation5 + $0x8] sm:$0xff] }
0x122f   :  { %v648_v49 = vmax.f32 %v646_v48, 0.0 }
0x1231   :  { %726 = vmatmul.msk.f32.gmra.mxu2 %vm67_vm1, %v648_v49 }
0x12b4   :  { %v683_v50 = vpop.f32.mrf.mxu2 }
0x12b5   :  { %v684_v51 = vadd.f32 %v1006_v6, %v683_v50 }
0x12b7   :  { %688 = vst.msk [vmem:[%s1060_s8 + $0x8] sm:$0xff] %vm686_vm4, %v684_v51 }
0x12b8   :  { %706 = vsyncpa [#allocation7], 1 }

// kernel: lstm_predictor_forward.2
= control target key start
LH: loop header
LB: loop body
LE: loop exit
PB: predicated region body
PF: predicated region fallthrough
CT: control target
= control target key end

     0   :  { %16 = vsyncpa [#allocation6], 0  ;;  %s819_s16 = smov [#allocation5]   ;;  %s820_s18 = smov 128   ;;  %s1056_s0 = inlined_call_operand.vmem [shape: f32[16,16], index: 0, kind: input, shape index: {}]   ;;  %s1057_s1 = inlined_call_operand.vmem [shape: f32[16,32], index: 1, kind: input, shape index: {}]   ;;  %s1058_s2 = inlined_call_operand.vmem [shape: f32[1,32], index: 2, kind: input, shape index: {}]   ;;  %s1059_s3 = inlined_call_operand.vmem [shape: f32[32,128], index: 3, kind: input, shape index: {}]   ;;  %s1060_s4 = inlined_call_operand.vmem [shape: f32[1,128], index: 4, kind: input, shape index: {}]   ;;  %s1061_s5 = inlined_call_operand.hbm [shape: f32[32,128], index: 5, kind: input, shape index: {}]   ;;  %s1062_s6 = inlined_call_operand.vmem [shape: f32[2,32], index: 6, kind: input, shape index: {}]   ;;  %s1063_s7 = inlined_call_operand.vmem [shape: f32[2,32], index: 7, kind: input, shape index: {}]   ;;  %s1064_s8 = inlined_call_operand.vmem [shape: f32[16,32], index: 8, kind: output, shape index: {0}]   ;;  %s1065_s9 = inlined_call_operand.vmem [shape: f32[2,32], index: 9, kind: output, shape index: {1}]   ;;  %s1066_s10 = inlined_call_operand.vmem [shape: f32[2,32], index: 10, kind: output, shape index: {2}]  }
   0x1   :  { %s31_s15 = sshll.u32 %s1061_s5, 4  ;;  %s33_s17 = sshll.u32 %s819_s16, 4  ;;  %s32_s15 = int_to_ptr.hbm [resolvable:$true] %s31_s15  ;;  %s34_s17 = int_to_ptr.vmem [resolvable:$true] %s33_s17 }
   0x2   :  { %s821_s19 = smov 8  }
   0x3   :  { %39 = dma.hbm_to_vmem [thread:$0]  %s32_s15, 512, %s34_s17, [#allocation6], %s820_s18, %s820_s18, %s821_s19  }
   0x4   :  { %817 = dma.done.wait [#allocation6], 512  }
   0x5   :  { %818 = vsyncadd [#allocation6], 4294966784  ;;  %v60_v0 = vld [vmem:[%s1057_s1 + $0x8] sm:$0xff]  ;;  %v59_v1 = vld [vmem:[%s1057_s1] sm:$0xff]  ;;  %vm65_vm0 = vcmask 130048   ;;  %vm53_vm1 = vcmask 254976  }
   0x6   :  { %86 = vmatpush.msra.mxu0 %v60_v0  ;;  %v57_v2 = vld [vmem:[%s1056_s0] sm:$0xff]  ;;  %v100_v3 = vld [vmem:[%s1059_s3 + $0x18] sm:$0xff]  ;;  %v99_v4 = vld [vmem:[%s1059_s3 + $0x10] sm:$0xff]  ;;  %vm105_vm2 = vcmask 261120   ;;  %s824_s30 = smov 96  }
   0x7   :  { %124 = vmatpush.msra.mxu1 %v100_v3  ;;  %v52_v5 = vld [vmem:[%s1062_s6] sm:$0x3]  ;;  %v98_v6 = vld [vmem:[%s1059_s3 + $0x8] sm:$0xff]  ;;  %v919_v11 = vld [vmem:[#allocation5] sm:$0xff] }
   0x8   :  { %87 = vmatpush.msra.mxu0 %v59_v1  ;;  %v905_v7 = vld [vmem:[#allocation5 + $0x18] sm:$0xff]  ;;  %54 = vst.msk [vmem:[#allocation3] sm:$0x3] %vm53_vm1, %v52_v5  ;;  %v97_v8 = vld [vmem:[%s1059_s3] sm:$0xff] }
   0x9   :  { %701 = vmatmul.msk.f32.vlgmr.msra.gmra.mxu0 %vm65_vm0, %v57_v2  ;;  %125 = vmatpush.msra.mxu1 %v99_v4  ;;  %v912_v9 = vld [vmem:[#allocation5 + $0x10] sm:$0xff]  ;;  %v917_v10 = vld [vmem:[#allocation5 + $0x8] sm:$0xff] }
   0xa   :  { %159 = vmatpush.msra.mxu2 %v905_v7  ;;  %230 = vmatpush.msra.mxu3 %v905_v7  ;;  %v949_v13 = vld [vmem:[%s1058_s2] ss:$0 sm:$0xff]  ;;  %s822_s2 = smov 64  }
   0xb   :  { %126 = vmatpush.msra.mxu1 %v98_v6  ;;  %428 = vmatpush.msrb.mxu0 %v905_v7  ;;  %v55_v17 = vld [vmem:[%s1063_s7] sm:$0x3]  ;;  %s823_s7 = smov 32  }
   0xc   :  { %160 = vmatpush.msra.mxu2 %v912_v9  ;;  %231 = vmatpush.msra.mxu3 %v912_v9  ;;  %56 = vst.msk [vmem:[#allocation4] sm:$0x3] %vm53_vm1, %v55_v17  ;;  %v960_v18 = vld [vmem:[%s1060_s4] ss:$0 sm:$0xff] }
   0xd   :  { %127 = vmatpush.msra.mxu1 %v97_v8  ;;  %429 = vmatpush.msrb.mxu0 %v912_v9 }
   0xe   :  { %161 = vmatpush.msra.mxu2 %v917_v10  ;;  %232 = vmatpush.msra.mxu3 %v917_v10 }
   0xf   :  { %494 = vmatpush.msrb.mxu1 %v905_v7  ;;  %430 = vmatpush.msrb.mxu0 %v917_v10  ;;  %v141_v12 = vld [vmem:[#allocation3] sm:$0x3] }
  0x10   :  { %162 = vmatpush.msra.mxu2 %v919_v11  ;;  %233 = vmatpush.msra.mxu3 %v919_v11 }
  0x11   :  { %495 = vmatpush.msrb.mxu1 %v912_v9  ;;  %705 = vmatmul.msk.f32.vlgmr.msra.gmra.mxu2 %vm105_vm2, %v141_v12 }
  0x12   :  { %296 = vmatpush.msrb.mxu2 %v905_v7  ;;  %362 = vmatpush.msrb.mxu3 %v905_v7 }
  0x13   :  { %431 = vmatpush.msrb.mxu0 %v919_v11  ;;  %496 = vmatpush.msrb.mxu1 %v917_v10  ;;  %v142_v25 = vld [vmem:[#allocation4] sm:$0x3] }
  0x14   :  { %297 = vmatpush.msrb.mxu2 %v912_v9  ;;  %363 = vmatpush.msrb.mxu3 %v912_v9 }
  0x15   :  { %497 = vmatpush.msrb.mxu1 %v919_v11 }
  0x16   :  { %298 = vmatpush.msrb.mxu2 %v917_v10  ;;  %364 = vmatpush.msrb.mxu3 %v917_v10 }
  0x18   :  { %299 = vmatpush.msrb.mxu2 %v919_v11  ;;  %365 = vmatpush.msrb.mxu3 %v919_v11 }
  0x1a   :  { %560 = vmatpush.msra.mxu2 %v905_v7 }
  0x1c   :  { %561 = vmatpush.msra.mxu2 %v912_v9 }
  0x1e   :  { %562 = vmatpush.msra.mxu2 %v917_v10 }
  0x20   :  { %563 = vmatpush.msra.mxu2 %v919_v11 }
  0x86   :  { %v89_v14 = vpop.f32.mrf.mxu0 }
  0x87   :  { %v90_v15 = vadd.f32 %v949_v13, %v89_v14 }
  0x89   :  { %v95_v16 = vmax.f32 %v90_v15, 0.0 }
  0x8b   :  { %703 = vmatmul.msk.f32.vlgmr.msra.gmra.mxu1 %vm105_vm2, %v95_v16 }
  0x94   :  { %v164_v21 = vpop.f32.mrf.mxu2 }
 0x108   :  { %v129_v19 = vpop.f32.mrf.mxu1 }
 0x109   :  { %v130_v20 = vadd.f32 %v960_v18, %v129_v19 }
 0x10b   :  { %135 = vst [vmem:[#allocation2] sm:$0xff] %v130_v20 }
 0x112   :  { %v143_v22 = vld [vmem:[#allocation2] sm:$0x3]  ;;  %v215_v49 = vld [vmem:[#allocation2 + $0x2] sm:$0x3] }
 0x113   :  { %v167_v23 = vadd.f32 %v164_v21, %v143_v22 }
 0x115   :  { %729 = vtanh.f32 %v167_v23  ;;  %v706_v26 = vmul.f32 -1.442695, %v167_v23 }
 0x117   :  { %731 = vpow2.f32 %v706_v26 }
 0x11b   :  { %v730_v24 = vpop.eup %729 }
 0x11c   :  { %194 = vrot.lane.b32.xlu0 %v730_v24, %s822_s2 }
 0x11d   :  { %v732_v27 = vpop.eup %731 }
 0x11e   :  { %v171_v28 = vadd.f32 1.0, %v732_v27 }
 0x120   :  { %733 = vrcp.f32 %v171_v28  ;;  %v183_v34 = vand.u32 2147483648, %v171_v28  ;;  %vm177_vm4 = vweird.f32 %v171_v28  ;;  %v181_v35 = vand.u32 2147483647, %v171_v28 }
 0x122   :  { %v184_v37 = vor.u32 1.1754944e-38, %v183_v34  ;;  %vm182_vm6 = vcmp.eq.f32.partialorder %v181_v35, 8.507059e+37 }
 0x124   :  { %189 = vrot.lane.b32.xlu0 %v142_v25, %s823_s7 }
 0x126   :  { %v734_v29 = vpop.eup %733 }
 0x127   :  { %v173_v30 = vmul.f32 %v734_v29, %v171_v28  ;;  %vm178_vm3 = vweird.f32 %v734_v29 }
 0x128   :  { %vm179_vm5 = vmor %vm177_vm4, %vm178_vm3 }
 0x129   :  { %v174_v31 = vsub.f32 1.0, %v173_v30 }
 0x12b   :  { %v175_v32 = vmul.f32 %v734_v29, %v174_v31 }
 0x12d   :  { %v176_v33 = vadd.f32 %v734_v29, %v175_v32 }
 0x12f   :  { %v180_v36 = vsel %vm179_vm5, %v734_v29, %v176_v33 }
 0x130   :  { %v185_v39 = vsel %vm182_vm6, %v184_v37, %v180_v36 }
 0x18e   :  { %v195_v38 = vpop.permute.xlu0 %194 }
 0x18f   :  { %v197_v40 = vmul.f32 %v195_v38, %v185_v39 }
 0x191   :  { %199 = vrot.lane.b32.xlu1 %v197_v40, %s823_s7 }
 0x196   :  { %v190_v41 = vpop.permute.xlu0 %189 }
 0x197   :  { %v192_v42 = vmul.f32 %v190_v41, %v185_v39 }
 0x203   :  { %v200_v43 = vpop.permute.xlu1 %199 }
 0x204   :  { %v202_v44 = vadd.f32 %v200_v43, %v192_v42 }
 0x206   :  { %735 = vtanh.f32 %v202_v44 }
 0x20c   :  { %v736_v45 = vpop.eup %735 }
 0x20d   :  { %205 = vrot.lane.b32.xlu1 %v736_v45, %s822_s2 }
 0x27f   :  { %v206_v46 = vpop.permute.xlu1 %205 }
 0x280   :  { %v208_v47 = vmul.f32 %v206_v46, %v185_v39  ;;  %v347_v39 = vld [vmem:[#allocation2 + $0x6] sm:$0x3] }
 0x282   :  { %210 = vrot.lane.b32.xlu2 %v208_v47, %s823_s7 }
 0x2dc   :  { %v211_v48 = vpop.permute.xlu2 %210 }
 0x2dd   :  { %214 = vst.msk [vmem:[%s1064_s8] sm:$0x3] %vm53_vm1, %v211_v48  ;;  %707 = vmatmul.msk.f32.vlgmr.msra.gmra.mxu3 %vm105_vm2, %v211_v48 }
 0x2de   :  { %626 = vmatpush.msra.mxu3 %v905_v7 }
 0x2e0   :  { %627 = vmatpush.msra.mxu3 %v912_v9 }
 0x2e2   :  { %628 = vmatpush.msra.mxu3 %v917_v10 }
 0x2e4   :  { %629 = vmatpush.msra.mxu3 %v919_v11  ;;  %v281_v11 = vld [vmem:[#allocation2 + $0x4] sm:$0x3] }
 0x360   :  { %v235_v50 = vpop.f32.mrf.mxu3 }
 0x361   :  { %v238_v51 = vadd.f32 %v235_v50, %v215_v49 }
 0x363   :  { %737 = vtanh.f32 %v238_v51  ;;  %v708_v53 = vmul.f32 -1.442695, %v238_v51 }
 0x365   :  { %739 = vpow2.f32 %v708_v53 }
 0x369   :  { %v738_v52 = vpop.eup %737 }
 0x36a   :  { %261 = vrot.lane.b32.xlu2 %v738_v52, %s822_s2 }
 0x36b   :  { %v740_v54 = vpop.eup %739 }
 0x36c   :  { %v242_v55 = vadd.f32 1.0, %v740_v54 }
 0x36e   :  { %741 = vrcp.f32 %v242_v55  ;;  %v254_v61 = vand.u32 2147483648, %v242_v55  ;;  %vm248_vm8 = vweird.f32 %v242_v55  ;;  %v252_v62 = vand.u32 2147483647, %v242_v55 }
 0x370   :  { %v255_v0 = vor.u32 1.1754944e-38, %v254_v61  ;;  %vm253_vm10 = vcmp.eq.f32.partialorder %v252_v62, 8.507059e+37 }
 0x374   :  { %v742_v56 = vpop.eup %741 }
 0x375   :  { %v244_v57 = vmul.f32 %v742_v56, %v242_v55  ;;  %vm249_vm7 = vweird.f32 %v742_v56 }
 0x376   :  { %vm250_vm9 = vmor %vm248_vm8, %vm249_vm7 }
 0x377   :  { %v245_v58 = vsub.f32 1.0, %v244_v57 }
 0x379   :  { %v246_v59 = vmul.f32 %v742_v56, %v245_v58  ;;  %v58_v58 = vld [vmem:[%s1056_s0 + $0x8] sm:$0xff] }
 0x37a   :  { %702 = vmatmul.msk.f32.gmra.mxu0 %vm65_vm0, %v58_v58 }
 0x37b   :  { %v247_v60 = vadd.f32 %v742_v56, %v246_v59 }
 0x37d   :  { %v251_v63 = vsel %vm250_vm9, %v742_v56, %v247_v60 }
 0x37e   :  { %v256_v2 = vsel %vm253_vm10, %v255_v0, %v251_v63 }
 0x37f   :  { %v259_v4 = vmul.f32 %v256_v2, %v202_v44 }
 0x3c4   :  { %v262_v1 = vpop.permute.xlu2 %261 }
 0x3c5   :  { %v264_v3 = vmul.f32 %v262_v1, %v256_v2 }
 0x3c7   :  { %266 = vrot.lane.b32.xlu0 %v264_v3, %s823_s7 }
 0x3f7   :  { %v92_v63 = vpop.f32.mrf.mxu0 }
 0x3f8   :  { %v93_v0 = vadd.f32 %v949_v13, %v92_v63 }
 0x3fa   :  { %v96_v1 = vmax.f32 %v93_v0, 0.0 }
 0x3fc   :  { %704 = vmatmul.msk.f32.gmra.mxu1 %vm105_vm2, %v96_v1 }
 0x439   :  { %v267_v5 = vpop.permute.xlu0 %266 }
 0x43a   :  { %v269_v6 = vadd.f32 %v267_v5, %v259_v4 }
 0x43c   :  { %743 = vtanh.f32 %v269_v6 }
 0x442   :  { %v744_v7 = vpop.eup %743 }
 0x443   :  { %272 = vrot.lane.b32.xlu1 %v744_v7, %s822_s2 }
 0x479   :  { %v132_v4 = vpop.f32.mrf.mxu1 }
 0x47a   :  { %v133_v5 = vadd.f32 %v960_v18, %v132_v4 }
 0x47c   :  { %136 = vst [vmem:[#allocation2 + $0x8] sm:$0xff] %v133_v5 }
 0x483   :  { %v413_v13 = vld [vmem:[#allocation2 + $0x8] sm:$0x3] }
 0x4b5   :  { %v273_v8 = vpop.permute.xlu1 %272 }
 0x4b6   :  { %v275_v9 = vmul.f32 %v273_v8, %v256_v2 }
 0x4b8   :  { %277 = vrot.lane.b32.xlu2 %v275_v9, %s823_s7 }
 0x512   :  { %v278_v10 = vpop.permute.xlu2 %277 }
 0x513   :  { %280 = vst.msk [vmem:[%s1064_s8 + $0x2] sm:$0x3] %vm53_vm1, %v278_v10  ;;  %709 = vmatmul.msk.f32.vlgmr.msrb.gmra.mxu2 %vm105_vm2, %v278_v10 }
 0x596   :  { %v301_v12 = vpop.f32.mrf.mxu2 }
 0x597   :  { %v304_v14 = vadd.f32 %v301_v12, %v281_v11 }
 0x599   :  { %745 = vtanh.f32 %v304_v14  ;;  %v710_v16 = vmul.f32 -1.442695, %v304_v14 }
 0x59b   :  { %747 = vpow2.f32 %v710_v16 }
 0x59f   :  { %v746_v15 = vpop.eup %745 }
 0x5a0   :  { %327 = vrot.lane.b32.xlu0 %v746_v15, %s822_s2 }
 0x5a1   :  { %v748_v17 = vpop.eup %747 }
 0x5a2   :  { %v308_v19 = vadd.f32 1.0, %v748_v17 }
 0x5a4   :  { %749 = vrcp.f32 %v308_v19  ;;  %v320_v25 = vand.u32 2147483648, %v308_v19  ;;  %vm314_vm12 = vweird.f32 %v308_v19  ;;  %v318_v26 = vand.u32 2147483647, %v308_v19 }
 0x5a6   :  { %v321_v28 = vor.u32 1.1754944e-38, %v320_v25  ;;  %vm319_vm14 = vcmp.eq.f32.partialorder %v318_v26, 8.507059e+37 }
 0x5aa   :  { %v750_v20 = vpop.eup %749 }
 0x5ab   :  { %v310_v21 = vmul.f32 %v750_v20, %v308_v19  ;;  %vm315_vm11 = vweird.f32 %v750_v20 }
 0x5ac   :  { %vm316_vm13 = vmor %vm314_vm12, %vm315_vm11 }
 0x5ad   :  { %v311_v22 = vsub.f32 1.0, %v310_v21 }
 0x5af   :  { %v312_v23 = vmul.f32 %v750_v20, %v311_v22 }
 0x5b1   :  { %v313_v24 = vadd.f32 %v750_v20, %v312_v23 }
 0x5b3   :  { %v317_v27 = vsel %vm316_vm13, %v750_v20, %v313_v24 }
 0x5b4   :  { %v322_v30 = vsel %vm319_vm14, %v321_v28, %v317_v27 }
 0x5b5   :  { %v325_v32 = vmul.f32 %v322_v30, %v269_v6 }
 0x612   :  { %v328_v29 = vpop.permute.xlu0 %327 }
 0x613   :  { %v330_v31 = vmul.f32 %v328_v29, %v322_v30 }
 0x615   :  { %332 = vrot.lane.b32.xlu1 %v330_v31, %s823_s7 }
 0x687   :  { %v333_v33 = vpop.permute.xlu1 %332 }
 0x688   :  { %v335_v34 = vadd.f32 %v333_v33, %v325_v32  ;;  %v479_v33 = vld [vmem:[#allocation2 + $0xa] sm:$0x3] }
 0x68a   :  { %751 = vtanh.f32 %v335_v34 }
 0x690   :  { %v752_v35 = vpop.eup %751 }
 0x691   :  { %338 = vrot.lane.b32.xlu2 %v752_v35, %s822_s2 }
 0x6eb   :  { %v339_v36 = vpop.permute.xlu2 %338 }
 0x6ec   :  { %v341_v37 = vmul.f32 %v339_v36, %v322_v30 }
 0x6ee   :  { %343 = vrot.lane.b32.xlu0 %v341_v37, %s823_s7 }
 0x760   :  { %v344_v38 = vpop.permute.xlu0 %343 }
 0x761   :  { %346 = vst.msk [vmem:[%s1064_s8 + $0x4] sm:$0x3] %vm53_vm1, %v344_v38  ;;  %711 = vmatmul.msk.f32.vlgmr.msrb.gmra.mxu3 %vm105_vm2, %v344_v38 }
 0x7e4   :  { %v367_v40 = vpop.f32.mrf.mxu3 }
 0x7e5   :  { %v370_v41 = vadd.f32 %v367_v40, %v347_v39 }
 0x7e7   :  { %753 = vtanh.f32 %v370_v41  ;;  %v712_v43 = vmul.f32 -1.442695, %v370_v41 }
 0x7e9   :  { %755 = vpow2.f32 %v712_v43 }
 0x7ed   :  { %v754_v42 = vpop.eup %753 }
 0x7ee   :  { %393 = vrot.lane.b32.xlu1 %v754_v42, %s822_s2 }
 0x7ef   :  { %v756_v44 = vpop.eup %755 }
 0x7f0   :  { %v374_v45 = vadd.f32 1.0, %v756_v44 }
 0x7f2   :  { %757 = vrcp.f32 %v374_v45  ;;  %v386_v51 = vand.u32 2147483648, %v374_v45  ;;  %vm380_vm3 = vweird.f32 %v374_v45  ;;  %v384_v52 = vand.u32 2147483647, %v374_v45 }
 0x7f4   :  { %v387_v54 = vor.u32 1.1754944e-38, %v386_v51  ;;  %vm385_vm5 = vcmp.eq.f32.partialorder %v384_v52, 8.507059e+37 }
 0x7f8   :  { %v758_v46 = vpop.eup %757 }
 0x7f9   :  { %v376_v47 = vmul.f32 %v758_v46, %v374_v45  ;;  %vm381_vm15 = vweird.f32 %v758_v46 }
 0x7fa   :  { %vm382_vm4 = vmor %vm380_vm3, %vm381_vm15 }
 0x7fb   :  { %v377_v48 = vsub.f32 1.0, %v376_v47 }
 0x7fd   :  { %v378_v49 = vmul.f32 %v758_v46, %v377_v48 }
 0x7ff   :  { %v379_v50 = vadd.f32 %v758_v46, %v378_v49 }
 0x801   :  { %v383_v53 = vsel %vm382_vm4, %v758_v46, %v379_v50 }
 0x802   :  { %v388_v56 = vsel %vm385_vm5, %v387_v54, %v383_v53 }
 0x803   :  { %v391_v59 = vmul.f32 %v388_v56, %v335_v34 }
 0x860   :  { %v394_v55 = vpop.permute.xlu1 %393 }
 0x861   :  { %v396_v57 = vmul.f32 %v394_v55, %v388_v56 }
 0x863   :  { %398 = vrot.lane.b32.xlu2 %v396_v57, %s823_s7 }
 0x8bd   :  { %v399_v60 = vpop.permute.xlu2 %398 }
 0x8be   :  { %v401_v61 = vadd.f32 %v399_v60, %v391_v59  ;;  %v545_v59 = vld [vmem:[#allocation2 + $0xc] sm:$0x3] }
 0x8c0   :  { %759 = vtanh.f32 %v401_v61 }
 0x8c6   :  { %v760_v62 = vpop.eup %759 }
 0x8c7   :  { %404 = vrot.lane.b32.xlu0 %v760_v62, %s822_s2 }
 0x939   :  { %v405_v2 = vpop.permute.xlu0 %404 }
 0x93a   :  { %v407_v3 = vmul.f32 %v405_v2, %v388_v56 }
 0x93c   :  { %409 = vrot.lane.b32.xlu1 %v407_v3, %s823_s7 }
 0x9ae   :  { %v410_v6 = vpop.permute.xlu1 %409 }
 0x9af   :  { %412 = vst.msk [vmem:[%s1064_s8 + $0x6] sm:$0x3] %vm53_vm1, %v410_v6  ;;  %713 = vmatmul.msk.f32.vlgmr.msrb.gmra.mxu0 %vm105_vm2, %v410_v6 }
 0xa2c   :  { %v433_v7 = vpop.f32.mrf.mxu0 }
 0xa2d   :  { %v436_v8 = vadd.f32 %v433_v7, %v413_v13 }
 0xa2f   :  { %761 = vtanh.f32 %v436_v8  ;;  %v714_v10 = vmul.f32 -1.442695, %v436_v8 }
 0xa31   :  { %763 = vpow2.f32 %v714_v10 }
 0xa35   :  { %v762_v9 = vpop.eup %761 }
 0xa36   :  { %459 = vrot.lane.b32.xlu2 %v762_v9, %s822_s2 }
 0xa37   :  { %v764_v11 = vpop.eup %763 }
 0xa38   :  { %v440_v18 = vadd.f32 1.0, %v764_v11 }
 0xa3a   :  { %765 = vrcp.f32 %v440_v18  ;;  %v452_v19 = vand.u32 2147483648, %v440_v18  ;;  %vm446_vm6 = vweird.f32 %v440_v18  ;;  %v450_v20 = vand.u32 2147483647, %v440_v18 }
 0xa3c   :  { %v453_v22 = vor.u32 1.1754944e-38, %v452_v19  ;;  %vm451_vm8 = vcmp.eq.f32.partialorder %v450_v20, 8.507059e+37 }
 0xa40   :  { %v766_v12 = vpop.eup %765 }
 0xa41   :  { %v442_v14 = vmul.f32 %v766_v12, %v440_v18  ;;  %vm447_vm0 = vweird.f32 %v766_v12 }
 0xa42   :  { %vm448_vm7 = vmor %vm446_vm6, %vm447_vm0 }
 0xa43   :  { %v443_v15 = vsub.f32 1.0, %v442_v14 }
 0xa45   :  { %v444_v16 = vmul.f32 %v766_v12, %v443_v15 }
 0xa47   :  { %v445_v17 = vadd.f32 %v766_v12, %v444_v16 }
 0xa49   :  { %v449_v21 = vsel %vm448_vm7, %v766_v12, %v445_v17 }
 0xa4a   :  { %v454_v24 = vsel %vm451_vm8, %v453_v22, %v449_v21  ;;  %v611_v21 = vld [vmem:[#allocation2 + $0xe] sm:$0x3] }
 0xa4b   :  { %v457_v26 = vmul.f32 %v454_v24, %v401_v61 }
 0xa90   :  { %v460_v23 = vpop.permute.xlu2 %459 }
 0xa91   :  { %v462_v25 = vmul.f32 %v460_v23, %v454_v24 }
 0xa93   :  { %464 = vrot.lane.b32.xlu0 %v462_v25, %s823_s7 }
 0xb05   :  { %v465_v27 = vpop.permute.xlu0 %464 }
 0xb06   :  { %v467_v28 = vadd.f32 %v465_v27, %v457_v26 }
 0xb08   :  { %767 = vtanh.f32 %v467_v28 }
 0xb0e   :  { %v768_v29 = vpop.eup %767 }
 0xb0f   :  { %470 = vrot.lane.b32.xlu1 %v768_v29, %s822_s2 }
 0xb81   :  { %v471_v30 = vpop.permute.xlu1 %470 }
 0xb82   :  { %v473_v31 = vmul.f32 %v471_v30, %v454_v24 }
 0xb84   :  { %475 = vrot.lane.b32.xlu2 %v473_v31, %s823_s7 }
 0xbde   :  { %v476_v32 = vpop.permute.xlu2 %475 }
 0xbdf   :  { %478 = vst.msk [vmem:[%s1064_s8 + $0x8] sm:$0x3] %vm53_vm1, %v476_v32  ;;  %715 = vmatmul.msk.f32.vlgmr.msrb.gmra.mxu1 %vm105_vm2, %v476_v32 }
 0xc5c   :  { %v499_v34 = vpop.f32.mrf.mxu1 }
 0xc5d   :  { %v502_v35 = vadd.f32 %v499_v34, %v479_v33 }
 0xc5f   :  { %769 = vtanh.f32 %v502_v35  ;;  %v716_v37 = vmul.f32 -1.442695, %v502_v35 }
 0xc61   :  { %771 = vpow2.f32 %v716_v37 }
 0xc65   :  { %v770_v36 = vpop.eup %769 }
 0xc66   :  { %525 = vrot.lane.b32.xlu0 %v770_v36, %s822_s2 }
 0xc67   :  { %v772_v38 = vpop.eup %771 }
 0xc68   :  { %v506_v39 = vadd.f32 1.0, %v772_v38 }
 0xc6a   :  { %773 = vrcp.f32 %v506_v39  ;;  %v518_v45 = vand.u32 2147483648, %v506_v39  ;;  %vm512_vm10 = vweird.f32 %v506_v39  ;;  %v516_v46 = vand.u32 2147483647, %v506_v39 }
 0xc6c   :  { %v519_v48 = vor.u32 1.1754944e-38, %v518_v45  ;;  %vm517_vm12 = vcmp.eq.f32.partialorder %v516_v46, 8.507059e+37 }
 0xc70   :  { %v774_v40 = vpop.eup %773 }
 0xc71   :  { %v508_v41 = vmul.f32 %v774_v40, %v506_v39  ;;  %vm513_vm9 = vweird.f32 %v774_v40 }
 0xc72   :  { %vm514_vm11 = vmor %vm512_vm10, %vm513_vm9 }
 0xc73   :  { %v509_v42 = vsub.f32 1.0, %v508_v41 }
 0xc75   :  { %v510_v43 = vmul.f32 %v774_v40, %v509_v42 }
 0xc77   :  { %v511_v44 = vadd.f32 %v774_v40, %v510_v43 }
 0xc79   :  { %v515_v47 = vsel %vm514_vm11, %v774_v40, %v511_v44 }
 0xc7a   :  { %v520_v50 = vsel %vm517_vm12, %v519_v48, %v515_v47 }
 0xc7b   :  { %v523_v52 = vmul.f32 %v520_v50, %v467_v28 }
 0xcd8   :  { %v526_v49 = vpop.permute.xlu0 %525 }
 0xcd9   :  { %v528_v51 = vmul.f32 %v526_v49, %v520_v50 }
 0xcdb   :  { %530 = vrot.lane.b32.xlu1 %v528_v51, %s823_s7 }
 0xd4d   :  { %v531_v53 = vpop.permute.xlu1 %530 }
 0xd4e   :  { %v533_v54 = vadd.f32 %v531_v53, %v523_v52 }
 0xd50   :  { %775 = vtanh.f32 %v533_v54 }
 0xd56   :  { %v776_v55 = vpop.eup %775 }
 0xd57   :  { %536 = vrot.lane.b32.xlu2 %v776_v55, %s822_s2 }
 0xdb1   :  { %v537_v56 = vpop.permute.xlu2 %536 }
 0xdb2   :  { %v539_v57 = vmul.f32 %v537_v56, %v520_v50 }
 0xdb4   :  { %541 = vrot.lane.b32.xlu0 %v539_v57, %s823_s7 }
 0xe26   :  { %v542_v58 = vpop.permute.xlu0 %541 }
 0xe27   :  { %544 = vst.msk [vmem:[%s1064_s8 + $0xa] sm:$0x3] %vm53_vm1, %v542_v58  ;;  %717 = vmatmul.msk.f32.vlgmr.msra.gmra.mxu2 %vm105_vm2, %v542_v58 }
 0xeaa   :  { %v565_v60 = vpop.f32.mrf.mxu2 }
 0xeab   :  { %v568_v61 = vadd.f32 %v565_v60, %v545_v59 }
 0xead   :  { %777 = vtanh.f32 %v568_v61  ;;  %v718_v63 = vmul.f32 -1.442695, %v568_v61 }
 0xeaf   :  { %779 = vpow2.f32 %v718_v63 }
 0xeb3   :  { %v778_v62 = vpop.eup %777 }
 0xeb4   :  { %591 = vrot.lane.b32.xlu1 %v778_v62, %s822_s2 }
 0xeb5   :  { %v780_v0 = vpop.eup %779 }
 0xeb6   :  { %v572_v1 = vadd.f32 1.0, %v780_v0 }
 0xeb8   :  { %781 = vrcp.f32 %v572_v1  ;;  %v584_v13 = vand.u32 2147483648, %v572_v1  ;;  %vm578_vm14 = vweird.f32 %v572_v1  ;;  %v582_v7 = vand.u32 2147483647, %v572_v1 }
 0xeba   :  { %v585_v9 = vor.u32 1.1754944e-38, %v584_v13  ;;  %vm583_vm3 = vcmp.eq.f32.partialorder %v582_v7, 8.507059e+37 }
 0xebe   :  { %v782_v2 = vpop.eup %781 }
 0xebf   :  { %v574_v3 = vmul.f32 %v782_v2, %v572_v1  ;;  %vm579_vm13 = vweird.f32 %v782_v2 }
 0xec0   :  { %vm580_vm15 = vmor %vm578_vm14, %vm579_vm13 }
 0xec1   :  { %v575_v4 = vsub.f32 1.0, %v574_v3 }
 0xec3   :  { %v576_v5 = vmul.f32 %v782_v2, %v575_v4 }
 0xec5   :  { %v577_v6 = vadd.f32 %v782_v2, %v576_v5 }
 0xec7   :  { %v581_v8 = vsel %vm580_vm15, %v782_v2, %v577_v6 }
 0xec8   :  { %v586_v11 = vsel %vm583_vm3, %v585_v9, %v581_v8 }
 0xec9   :  { %v589_v12 = vmul.f32 %v586_v11, %v533_v54 }
 0xf26   :  { %v592_v10 = vpop.permute.xlu1 %591 }
 0xf27   :  { %v594_v18 = vmul.f32 %v592_v10, %v586_v11 }
 0xf29   :  { %596 = vrot.lane.b32.xlu2 %v594_v18, %s823_s7 }
 0xf83   :  { %v597_v14 = vpop.permute.xlu2 %596 }
 0xf84   :  { %v599_v15 = vadd.f32 %v597_v14, %v589_v12 }
 0xf86   :  { %783 = vtanh.f32 %v599_v15 }
 0xf8c   :  { %v784_v16 = vpop.eup %783 }
 0xf8d   :  { %602 = vrot.lane.b32.xlu0 %v784_v16, %s822_s2 }
 0xfff   :  { %v603_v17 = vpop.permute.xlu0 %602 }
0x1000   :  { %v605_v19 = vmul.f32 %v603_v17, %v586_v11 }
0x1002   :  { %607 = vrot.lane.b32.xlu1 %v605_v19, %s823_s7 }
0x1074   :  { %v608_v20 = vpop.permute.xlu1 %607 }
0x1075   :  { %610 = vst.msk [vmem:[%s1064_s8 + $0xc] sm:$0x3] %vm53_vm1, %v608_v20  ;;  %719 = vmatmul.msk.f32.vlgmr.msra.gmra.mxu3 %vm105_vm2, %v608_v20 }
0x10f8   :  { %v631_v22 = vpop.f32.mrf.mxu3 }
0x10f9   :  { %v634_v23 = vadd.f32 %v631_v22, %v611_v21 }
0x10fb   :  { %785 = vtanh.f32 %v634_v23  ;;  %v720_v25 = vmul.f32 -1.442695, %v634_v23 }
0x10fd   :  { %787 = vpow2.f32 %v720_v25 }
0x1101   :  { %v786_v24 = vpop.eup %785 }
0x1102   :  { %657 = vrot.lane.b32.xlu2 %v786_v24, %s822_s2 }
0x1103   :  { %v788_v26 = vpop.eup %787 }
0x1104   :  { %v638_v27 = vadd.f32 1.0, %v788_v26 }
0x1106   :  { %789 = vrcp.f32 %v638_v27  ;;  %v650_v33 = vand.u32 2147483648, %v638_v27  ;;  %vm644_vm2 = vweird.f32 %v638_v27  ;;  %v648_v34 = vand.u32 2147483647, %v638_v27 }
0x1108   :  { %v651_v36 = vor.u32 1.1754944e-38, %v650_v33  ;;  %vm649_vm0 = vcmp.eq.f32.partialorder %v648_v34, 8.507059e+37 }
0x110c   :  { %v790_v28 = vpop.eup %789 }
0x110d   :  { %v640_v29 = vmul.f32 %v790_v28, %v638_v27  ;;  %vm645_vm4 = vweird.f32 %v790_v28 }
0x110e   :  { %vm646_vm5 = vmor %vm644_vm2, %vm645_vm4 }
0x110f   :  { %v641_v30 = vsub.f32 1.0, %v640_v29 }
0x1111   :  { %v642_v31 = vmul.f32 %v790_v28, %v641_v30 }
0x1113   :  { %v643_v32 = vadd.f32 %v790_v28, %v642_v31 }
0x1115   :  { %v647_v35 = vsel %vm646_vm5, %v790_v28, %v643_v32 }
0x1116   :  { %v652_v38 = vsel %vm649_vm0, %v651_v36, %v647_v35 }
0x1117   :  { %v655_v40 = vmul.f32 %v652_v38, %v599_v15 }
0x115c   :  { %v658_v37 = vpop.permute.xlu2 %657 }
0x115d   :  { %v660_v39 = vmul.f32 %v658_v37, %v652_v38 }
0x115f   :  { %662 = vrot.lane.b32.xlu0 %v660_v39, %s823_s7 }
0x11d1   :  { %v663_v41 = vpop.permute.xlu0 %662 }
0x11d2   :  { %v665_v42 = vadd.f32 %v663_v41, %v655_v40 }
0x11d4   :  { %791 = vtanh.f32 %v665_v42  ;;  %679 = vrot.lane.b32.xlu0 %v665_v42, %s824_s30 }
0x11da   :  { %v792_v43 = vpop.eup %791 }
0x11db   :  { %668 = vrot.lane.b32.xlu1 %v792_v43, %s822_s2 }
0x1246   :  { %v680_v44 = vpop.permute.xlu0 %679 }
0x1247   :  { %682 = vst.msk [vmem:[#allocation4] sm:$0x3] %vm53_vm1, %v680_v44 }
0x1248   :  { %687 = vst.msk [vmem:[%s1066_s10] sm:$0x3] %vm53_vm1, %v680_v44 }
0x124d   :  { %v669_v45 = vpop.permute.xlu1 %668 }
0x124e   :  { %v671_v46 = vmul.f32 %v669_v45, %v652_v38 }
0x1250   :  { %673 = vrot.lane.b32.xlu2 %v671_v46, %s823_s7 }
0x12aa   :  { %v674_v47 = vpop.permute.xlu2 %673 }
0x12ab   :  { %676 = vst.msk [vmem:[%s1064_s8 + $0xe] sm:$0x3] %vm53_vm1, %v674_v47 }
0x12ac   :  { %677 = vst.msk [vmem:[#allocation3] sm:$0x3] %vm53_vm1, %v674_v47 }
0x12ad   :  { %686 = vst.msk [vmem:[%s1065_s9] sm:$0x3] %vm53_vm1, %v674_v47 }
0x12ae   :  { %700 = vsyncpa [#allocation6], 1 }

</bundles_post_ra>
